<compile_context>
chip_gen: v6e
topology: v6e:2x2x1
jax: 0.10.0
libtpu: 0.0.40
codegen_flags: <defaults>
</compile_context>

<pallas_src>
import math

import jax
import jax.numpy as jnp
from jax.experimental import pallas as pl
from jax.experimental.pallas import tpu as pltpu

# ----- model hyper-parameters (small, consistent with the module) -----------
BATCH = 2
MAX_ENTITY_NUM = 4          # args.max_candidate_num == textual_sequence_num
SEQ_LEN = 8                 # sequence_len
HIDDEN = 32                 # encoder hidden size (pooled_output dim)
NUM_HEADS = 2
HEAD_DIM = HIDDEN // NUM_HEADS
FFN_DIM = 64
VOCAB = 50
N_SEQ = BATCH * MAX_ENTITY_NUM
NL = N_SEQ * SEQ_LEN        # all tokens of all sequences, flattened
NEG_INF = -1e9

# rows of the packed bias / LayerNorm-parameter table (each row padded to FFN_DIM lanes)
(ROW_EMB_LN_G, ROW_EMB_LN_B,
 ROW_BQ, ROW_BK, ROW_BV, ROW_BO,
 ROW_LN1_G, ROW_LN1_B,
 ROW_B1, ROW_B2,
 ROW_LN2_G, ROW_LN2_B,
 ROW_BP) = range(13)
NUM_VEC_ROWS = 13


# ----- numeric helpers used inside the kernel --------------------------------
def _layer_norm(x, gamma, beta, eps=1e-12):
    mu = jnp.mean(x, axis=-1, keepdims=True)
    var = jnp.mean((x - mu) ** 2, axis=-1, keepdims=True)
    return (x - mu) * jax.lax.rsqrt(var + eps) * gamma + beta


def _gelu_tanh(x):
    c = math.sqrt(2.0 / math.pi)
    return 0.5 * x * (1.0 + jnp.tanh(c * (x + 0.044715 * x * x * x)))


# ----- Pallas kernel: embeddings + transformer layer + pooler, ALL sequences --
def encoder_kernel(ids_ref, type_ref, row_seg_ref, col_key_ref,
                   word_emb_ref, pos_emb_ref, type_emb_ref,
                   wqkv_ref, wo_ref, w1_ref, w2_ref, wp_ref,
                   vecs_ref, out_ref):
    f32 = jnp.float32
    bf16 = jnp.bfloat16
    vecs = vecs_ref[...]                                   # (13, FFN_DIM) packed params

    def vec(row, width=HIDDEN):
        return vecs[row:row + 1, :width]                   # (1, width) static slice

    # --- embeddings: one-hot-matmul gather + pos + type, then LayerNorm -------
    ids = ids_ref[...]                                     # (NL, 1) int32
    vocab_ids = jax.lax.broadcasted_iota(jnp.int32, (NL, VOCAB), 1)
    onehot = (vocab_ids == ids).astype(f32)                # (NL, VOCAB)
    word = jnp.dot(onehot, word_emb_ref[...], preferred_element_type=f32)  # exact gather

    pos = jnp.concatenate([pos_emb_ref[...]] * N_SEQ, axis=0)   # (NL, H)

    t = type_ref[...].astype(f32)                          # (NL, 1)
    te = type_emb_ref[...]                                 # (2, H)
    type_vec = te[0:1, :] * (1.0 - t) + te[1:2, :] * t     # (NL, H)

    x = _layer_norm(word + pos + type_vec,
                    vec(ROW_EMB_LN_G), vec(ROW_EMB_LN_B))  # (NL, H) f32

    # --- block-diagonal additive attention bias (same-sequence AND key valid) -
    # row_seg: sequence-id+1 per query row; col_key: sequence-id+1 if key valid else 0
    allowed = row_seg_ref[...] == col_key_ref[...]         # (NL,1)==(1,NL) -> (NL,NL)
    bias = jnp.where(allowed, 0.0, NEG_INF).astype(f32)

    # --- fused QKV projection for all sequences (64-row matmul, bf16 operands)
    x_bf = x.astype(bf16)
    qkv = jnp.dot(x_bf, wqkv_ref[...], preferred_element_type=f32)    # (NL, 3H)
    q = qkv[:, 0:HIDDEN] + vec(ROW_BQ)
    k = qkv[:, HIDDEN:2 * HIDDEN] + vec(ROW_BK)
    v = qkv[:, 2 * HIDDEN:3 * HIDDEN] + vec(ROW_BV)

    # --- multi-head attention; heads unrolled, output proj split per head -----
    wo = wo_ref[...]
    inv_sqrt_d = 1.0 / math.sqrt(HEAD_DIM)
    acc = jnp.zeros((NL, HIDDEN), f32)
    for h in range(NUM_HEADS):
        lo, hi = h * HEAD_DIM, (h + 1) * HEAD_DIM
        qh = q[:, lo:hi].astype(bf16)
        kh = k[:, lo:hi].astype(bf16)
        vh = v[:, lo:hi].astype(bf16)
        s = jnp.einsum('qd,kd->qk', qh, kh,
                       preferred_element_type=f32) * inv_sqrt_d + bias   # (NL, NL)
        s = s - jnp.max(s, axis=-1, keepdims=True)          # stable softmax (f32)
        p = jnp.exp(s)
        p = p / jnp.sum(p, axis=-1, keepdims=True)          # exact divide
        ctx = jnp.dot(p.astype(bf16), vh, preferred_element_type=f32)    # (NL, HD)
        acc = acc + jnp.dot(ctx.astype(bf16), wo[lo:hi, :],
                            preferred_element_type=f32)     # no concatenate needed
    attn = acc + vec(ROW_BO)
    h1 = _layer_norm(x + attn, vec(ROW_LN1_G), vec(ROW_LN1_B))

    # --- feed-forward ----------------------------------------------------------
    ff = jnp.dot(h1.astype(bf16), w1_ref[...], preferred_element_type=f32) \
        + vec(ROW_B1, FFN_DIM)
    ff = _gelu_tanh(ff)
    ff = jnp.dot(ff.astype(bf16), w2_ref[...], preferred_element_type=f32) \
        + vec(ROW_B2)
    h2 = _layer_norm(h1 + ff, vec(ROW_LN2_G), vec(ROW_LN2_B))

    # --- pooler: pick [CLS] row of each sequence via one-hot matmul, dense+tanh
    sel_row = jax.lax.broadcasted_iota(jnp.int32, (N_SEQ, NL), 0)
    sel_col = jax.lax.broadcasted_iota(jnp.int32, (N_SEQ, NL), 1)
    sel = (sel_col == sel_row * SEQ_LEN).astype(f32)        # (N_SEQ, NL) exact selection
    cls = jnp.dot(sel, h2, preferred_element_type=f32)      # (N_SEQ, H)
    pooled = jnp.tanh(jnp.dot(cls.astype(bf16), wp_ref[...],
                              preferred_element_type=f32) + vec(ROW_BP))
    out_ref[...] = pooled                                   # (N_SEQ, H), single store


# ----- pallas_call wrapper ----------------------------------------------------
def _full_spec(shape):
    # every operand is 2D and passed as one whole block (single grid step)
    return pl.BlockSpec(shape, lambda i: (0, 0))


def run_encoder_kernel(ids2d, type2d, row_seg, col_key, p):
    inputs = (ids2d, type2d, row_seg, col_key,
              p["word_emb"], p["pos_emb"], p["type_emb"],
              p["wqkv"], p["wo"], p["w1"], p["w2"], p["wp"], p["vecs"])
    in_specs = [_full_spec(a.shape) for a in inputs]

    flops = 2 * (NL * VOCAB * HIDDEN                       # embedding one-hot gather
                 + NL * HIDDEN * 3 * HIDDEN                # fused QKV
                 + NUM_HEADS * (2 * NL * NL * HEAD_DIM     # scores + PV
                                + NL * HEAD_DIM * HIDDEN)  # per-head output proj
                 + 2 * NL * HIDDEN * FFN_DIM               # FFN
                 + N_SEQ * NL * HIDDEN                     # CLS selection
                 + N_SEQ * HIDDEN * HIDDEN)                # pooler
    bytes_accessed = sum(a.size * a.dtype.itemsize for a in inputs) + N_SEQ * HIDDEN * 4
    cost = pl.CostEstimate(
        flops=flops,
        transcendentals=NUM_HEADS * NL * NL + NL * FFN_DIM + N_SEQ * HIDDEN,
        bytes_accessed=bytes_accessed)

    out = pl.pallas_call(
        encoder_kernel,
        out_shape=jax.ShapeDtypeStruct((N_SEQ, HIDDEN), jnp.float32),
        grid=(1,),                                          # single step: no per-step overhead
        in_specs=in_specs,
        out_specs=pl.BlockSpec((N_SEQ, HIDDEN), lambda i: (0, 0)),
        compiler_params=pltpu.CompilerParams(
            dimension_semantics=("arbitrary",)),
        cost_estimate=cost,
    )(*inputs)
    return out  # (N_SEQ, H)


# ----- parameter init (deterministic, synthetic) ------------------------------
def init_params(key):
    ks = list(jax.random.split(key, 10))

    def dense(k, din, dout):
        return 0.05 * jax.random.normal(k, (din, dout), jnp.float32)

    return {
        "word_emb": 0.05 * jax.random.normal(ks[0], (VOCAB, HIDDEN), jnp.float32),
        "pos_emb": 0.05 * jax.random.normal(ks[1], (SEQ_LEN, HIDDEN), jnp.float32),
        "type_emb": 0.05 * jax.random.normal(ks[2], (2, HIDDEN), jnp.float32),
        "emb_ln_g": jnp.ones((1, HIDDEN), jnp.float32),
        "emb_ln_b": jnp.zeros((1, HIDDEN), jnp.float32),
        "wq": dense(ks[3], HIDDEN, HIDDEN), "bq": jnp.zeros((1, HIDDEN), jnp.float32),
        "wk": dense(ks[4], HIDDEN, HIDDEN), "bk": jnp.zeros((1, HIDDEN), jnp.float32),
        "wv": dense(ks[5], HIDDEN, HIDDEN), "bv": jnp.zeros((1, HIDDEN), jnp.float32),
        "wo": dense(ks[6], HIDDEN, HIDDEN), "bo": jnp.zeros((1, HIDDEN), jnp.float32),
        "ln1_g": jnp.ones((1, HIDDEN), jnp.float32),
        "ln1_b": jnp.zeros((1, HIDDEN), jnp.float32),
        "w1": dense(ks[7], HIDDEN, FFN_DIM), "b1": jnp.zeros((1, FFN_DIM), jnp.float32),
        "w2": dense(ks[8], FFN_DIM, HIDDEN), "b2": jnp.zeros((1, HIDDEN), jnp.float32),
        "ln2_g": jnp.ones((1, HIDDEN), jnp.float32),
        "ln2_b": jnp.zeros((1, HIDDEN), jnp.float32),
        "wp": dense(ks[9], HIDDEN, HIDDEN), "bp": jnp.zeros((1, HIDDEN), jnp.float32),
    }


def pack_params(p):
    """Pack the many tiny weights into few, larger kernel operands (fewer DMAs)."""
    def pad_row(v):
        return jnp.pad(v, ((0, 0), (0, FFN_DIM - v.shape[1])))

    vecs = jnp.concatenate([
        pad_row(p["emb_ln_g"]), pad_row(p["emb_ln_b"]),
        pad_row(p["bq"]), pad_row(p["bk"]), pad_row(p["bv"]), pad_row(p["bo"]),
        pad_row(p["ln1_g"]), pad_row(p["ln1_b"]),
        p["b1"],
        pad_row(p["b2"]), pad_row(p["ln2_g"]), pad_row(p["ln2_b"]),
        pad_row(p["bp"]),
    ], axis=0).astype(jnp.float32)                          # (NUM_VEC_ROWS, FFN_DIM)

    return {
        "word_emb": p["word_emb"].astype(jnp.float32),
        "pos_emb": p["pos_emb"].astype(jnp.float32),
        "type_emb": p["type_emb"].astype(jnp.float32),
        "wqkv": jnp.concatenate([p["wq"], p["wk"], p["wv"]], axis=1).astype(jnp.bfloat16),
        "wo": p["wo"].astype(jnp.bfloat16),
        "w1": p["w1"].astype(jnp.bfloat16),
        "w2": p["w2"].astype(jnp.bfloat16),
        "wp": p["wp"].astype(jnp.bfloat16),
        "vecs": vecs,
    }


# ----- module forward (mirrors EncoderForReviewAttributePair.forward) --------
@jax.jit
def encoder_for_review_attribute_pair_forward(params, input_ids, attention_mask,
                                              token_type_ids):
    batch_size, textual_sequence_num, sequence_len = input_ids.shape
    n = batch_size * textual_sequence_num
    nl = n * sequence_len
    assert (n, sequence_len) == (N_SEQ, SEQ_LEN)

    if token_type_ids is None:
        token_type_ids = jnp.zeros_like(input_ids)
    # TODO(synk): token_type_ids=None branch handled identically by passing zeros.

    # reshape (B, T, L) -> flattened token rows; all heavy lifting is in the kernel
    ids2d = input_ids.reshape(nl, 1).astype(jnp.int32)
    type2d = token_type_ids.reshape(nl, 1).astype(jnp.int32)

    # sequence-segment id (+1) per token; column key combines segment id and key
    # validity (0 == masked-out key) so the kernel mask is a single equality test.
    seg = jnp.repeat(jnp.arange(n, dtype=jnp.int32), sequence_len) + 1
    row_seg = seg.reshape(nl, 1)
    col_key = (seg * attention_mask.reshape(nl).astype(jnp.int32)).reshape(1, nl)

    packed = pack_params(params)
    pooled = run_encoder_kernel(ids2d, type2d, row_seg, col_key, packed)   # (N, H)

    original_shape_mention_attribute_embeds = pooled.reshape(
        batch_size, MAX_ENTITY_NUM, -1)
    return original_shape_mention_attribute_embeds, batch_size


if __name__ == "__main__":
    key = jax.random.PRNGKey(0)
    k_ids, k_mask, k_params = jax.random.split(key, 3)

    input_ids = jax.random.randint(
        k_ids, (BATCH, MAX_ENTITY_NUM, SEQ_LEN), 0, VOCAB, dtype=jnp.int32)
    # valid lengths between 4 and SEQ_LEN
    lens = jax.random.randint(k_mask, (BATCH, MAX_ENTITY_NUM, 1), 4, SEQ_LEN + 1)
    attention_mask = (jnp.arange(SEQ_LEN)[None, None, :] < lens).astype(jnp.int32)
    token_type_ids = jnp.zeros((BATCH, MAX_ENTITY_NUM, SEQ_LEN), jnp.int32)

    params = init_params(k_params)

    embeds, bsz = encoder_for_review_attribute_pair_forward(
        params, input_ids, attention_mask, token_type_ids)
    embeds = jax.block_until_ready(embeds)

    assert embeds.shape == (BATCH, MAX_ENTITY_NUM, HIDDEN)
    assert bool(jnp.all(jnp.isfinite(embeds)))
    print("KERNEL_OK")
</pallas_src>

<mosaic_0001>
module attributes {stable_mosaic.version = 11 : i64} {
  func.func @encoder_kernel(%arg0: i32, %arg1: memref<64x1xi32, #tpu.memory_space<vmem>>, %arg2: memref<64x1xi32, #tpu.memory_space<vmem>>, %arg3: memref<64x1xi32, #tpu.memory_space<vmem>>, %arg4: memref<1x64xi32, #tpu.memory_space<vmem>>, %arg5: memref<50x32xf32, #tpu.memory_space<vmem>>, %arg6: memref<8x32xf32, #tpu.memory_space<vmem>>, %arg7: memref<2x32xf32, #tpu.memory_space<vmem>>, %arg8: memref<32x96xbf16, #tpu.memory_space<vmem>>, %arg9: memref<32x32xbf16, #tpu.memory_space<vmem>>, %arg10: memref<32x64xbf16, #tpu.memory_space<vmem>>, %arg11: memref<64x32xbf16, #tpu.memory_space<vmem>>, %arg12: memref<32x32xbf16, #tpu.memory_space<vmem>>, %arg13: memref<13x64xf32, #tpu.memory_space<vmem>>, %arg14: memref<8x32xf32, #tpu.memory_space<vmem>>) attributes {dimension_semantics = [#tpu.dimension_semantics<arbitrary>], iteration_bounds = array<i64: 1>, scalar_prefetch = 0 : i64, scratch_operands = 0 : i64, tpu.core_type = #tpu.core_type<tc>, window_params = [{pipeline_mode = #tpu.pipeline_mode<synchronous>, transform_indices = @transform_0, window_bounds = array<i64: 64, 1>}, {pipeline_mode = #tpu.pipeline_mode<synchronous>, transform_indices = @transform_1, window_bounds = array<i64: 64, 1>}, {pipeline_mode = #tpu.pipeline_mode<synchronous>, transform_indices = @transform_2, window_bounds = array<i64: 64, 1>}, {pipeline_mode = #tpu.pipeline_mode<synchronous>, transform_indices = @transform_3, window_bounds = array<i64: 1, 64>}, {pipeline_mode = #tpu.pipeline_mode<synchronous>, transform_indices = @transform_4, window_bounds = array<i64: 50, 32>}, {pipeline_mode = #tpu.pipeline_mode<synchronous>, transform_indices = @transform_5, window_bounds = array<i64: 8, 32>}, {pipeline_mode = #tpu.pipeline_mode<synchronous>, transform_indices = @transform_6, window_bounds = array<i64: 2, 32>}, {pipeline_mode = #tpu.pipeline_mode<synchronous>, transform_indices = @transform_7, window_bounds = array<i64: 32, 96>}, {pipeline_mode = #tpu.pipeline_mode<synchronous>, transform_indices = @transform_8, window_bounds = array<i64: 32, 32>}, {pipeline_mode = #tpu.pipeline_mode<synchronous>, transform_indices = @transform_9, window_bounds = array<i64: 32, 64>}, {pipeline_mode = #tpu.pipeline_mode<synchronous>, transform_indices = @transform_10, window_bounds = array<i64: 64, 32>}, {pipeline_mode = #tpu.pipeline_mode<synchronous>, transform_indices = @transform_11, window_bounds = array<i64: 32, 32>}, {pipeline_mode = #tpu.pipeline_mode<synchronous>, transform_indices = @transform_12, window_bounds = array<i64: 13, 64>}, {pipeline_mode = #tpu.pipeline_mode<synchronous>, transform_indices = @transform_13, window_bounds = array<i64: 8, 32>}]} {
    %c0 = arith.constant 0 : index
    %c0_0 = arith.constant 0 : index
    %0 = vector.load %arg13[%c0, %c0_0] : memref<13x64xf32, #tpu.memory_space<vmem>>, vector<13x64xf32>
    %c0_1 = arith.constant 0 : index
    %c0_2 = arith.constant 0 : index
    %1 = vector.load %arg1[%c0_1, %c0_2] : memref<64x1xi32, #tpu.memory_space<vmem>>, vector<64x1xi32>
    %2 = tpu.iota {dimensions = array<i32: 1>} : vector<64x50xi32>
    %3 = vector.broadcast %1 : vector<64x1xi32> to vector<64x50xi32>
    %4 = arith.cmpi eq, %2, %3 : vector<64x50xi32>
    %5 = arith.extui %4 : vector<64x50xi1> to vector<64x50xi32>
    %6 = arith.sitofp %5 : vector<64x50xi32> to vector<64x50xf32>
    %c0_3 = arith.constant 0 : index
    %c0_4 = arith.constant 0 : index
    %7 = vector.load %arg5[%c0_3, %c0_4] : memref<50x32xf32, #tpu.memory_space<vmem>>, vector<50x32xf32>
    %cst = arith.constant dense<0.000000e+00> : vector<64x32xf32>
    %8 = tpu.matmul %6, %7, %cst {dimension_numbers = #tpu.dot_dimension_numbers<[1], [0], [0], [1], [0, 0, 1, 1], [], []>} : vector<64x50xf32>, vector<50x32xf32>, vector<64x32xf32> -> vector<64x32xf32>
    %c0_5 = arith.constant 0 : index
    %c0_6 = arith.constant 0 : index
    %9 = vector.load %arg6[%c0_5, %c0_6] : memref<8x32xf32, #tpu.memory_space<vmem>>, vector<8x32xf32>
    %10 = tpu.concatenate %9, %9, %9, %9, %9, %9, %9, %9 in 0 : vector<8x32xf32>, vector<8x32xf32>, vector<8x32xf32>, vector<8x32xf32>, vector<8x32xf32>, vector<8x32xf32>, vector<8x32xf32>, vector<8x32xf32> -> vector<64x32xf32>
    %c0_7 = arith.constant 0 : index
    %c0_8 = arith.constant 0 : index
    %11 = vector.load %arg2[%c0_7, %c0_8] : memref<64x1xi32, #tpu.memory_space<vmem>>, vector<64x1xi32>
    %12 = arith.sitofp %11 : vector<64x1xi32> to vector<64x1xf32>
    %c0_9 = arith.constant 0 : index
    %c0_10 = arith.constant 0 : index
    %13 = vector.load %arg7[%c0_9, %c0_10] : memref<2x32xf32, #tpu.memory_space<vmem>>, vector<2x32xf32>
    %14 = vector.extract_strided_slice %13 {offsets = [0, 0], sizes = [1, 32], strides = [1, 1]} : vector<2x32xf32> to vector<1x32xf32>
    %cst_11 = arith.constant 1.000000e+00 : f32
    %15 = vector.broadcast %cst_11 : f32 to vector<64x1xf32>
    %16 = arith.subf %15, %12 : vector<64x1xf32>
    %17 = vector.broadcast %14 : vector<1x32xf32> to vector<64x32xf32>
    %18 = vector.broadcast %16 : vector<64x1xf32> to vector<64x32xf32>
    %19 = arith.mulf %17, %18 : vector<64x32xf32>
    %20 = vector.extract_strided_slice %13 {offsets = [1, 0], sizes = [1, 32], strides = [1, 1]} : vector<2x32xf32> to vector<1x32xf32>
    %21 = vector.broadcast %20 : vector<1x32xf32> to vector<64x32xf32>
    %22 = vector.broadcast %12 : vector<64x1xf32> to vector<64x32xf32>
    %23 = arith.mulf %21, %22 : vector<64x32xf32>
    %24 = arith.addf %19, %23 : vector<64x32xf32>
    %25 = arith.addf %8, %10 : vector<64x32xf32>
    %26 = arith.addf %25, %24 : vector<64x32xf32>
    %27 = vector.extract_strided_slice %0 {offsets = [0, 0], sizes = [1, 32], strides = [1, 1]} : vector<13x64xf32> to vector<1x32xf32>
    %28 = vector.extract_strided_slice %0 {offsets = [1, 0], sizes = [1, 32], strides = [1, 1]} : vector<13x64xf32> to vector<1x32xf32>
    %cst_12 = arith.constant dense<0.000000e+00> : vector<64xf32>
    %29 = vector.multi_reduction <add>, %26, %cst_12 [1] : vector<64x32xf32> to vector<64xf32>
    %30 = vector.shape_cast %29 : vector<64xf32> to vector<64x1xf32>
    %cst_13 = arith.constant 3.200000e+01 : f32
    %31 = vector.broadcast %cst_13 : f32 to vector<64x1xf32>
    %32 = arith.divf %30, %31 : vector<64x1xf32>
    %33 = vector.broadcast %32 : vector<64x1xf32> to vector<64x32xf32>
    %34 = arith.subf %26, %33 : vector<64x32xf32>
    %35 = arith.mulf %34, %34 : vector<64x32xf32>
    %cst_14 = arith.constant dense<0.000000e+00> : vector<64xf32>
    %36 = vector.multi_reduction <add>, %35, %cst_14 [1] : vector<64x32xf32> to vector<64xf32>
    %37 = vector.shape_cast %36 : vector<64xf32> to vector<64x1xf32>
    %cst_15 = arith.constant 3.200000e+01 : f32
    %38 = vector.broadcast %cst_15 : f32 to vector<64x1xf32>
    %39 = arith.divf %37, %38 : vector<64x1xf32>
    %40 = vector.broadcast %32 : vector<64x1xf32> to vector<64x32xf32>
    %41 = arith.subf %26, %40 : vector<64x32xf32>
    %cst_16 = arith.constant 9.99999996E-13 : f32
    %42 = vector.broadcast %cst_16 : f32 to vector<64x1xf32>
    %43 = arith.addf %39, %42 : vector<64x1xf32>
    %44 = math.rsqrt %43 : vector<64x1xf32>
    %45 = vector.broadcast %44 : vector<64x1xf32> to vector<64x32xf32>
    %46 = arith.mulf %41, %45 : vector<64x32xf32>
    %47 = vector.broadcast %27 : vector<1x32xf32> to vector<64x32xf32>
    %48 = arith.mulf %46, %47 : vector<64x32xf32>
    %49 = vector.broadcast %28 : vector<1x32xf32> to vector<64x32xf32>
    %50 = arith.addf %48, %49 : vector<64x32xf32>
    %c0_17 = arith.constant 0 : index
    %c0_18 = arith.constant 0 : index
    %51 = vector.load %arg3[%c0_17, %c0_18] : memref<64x1xi32, #tpu.memory_space<vmem>>, vector<64x1xi32>
    %c0_19 = arith.constant 0 : index
    %c0_20 = arith.constant 0 : index
    %52 = vector.load %arg4[%c0_19, %c0_20] : memref<1x64xi32, #tpu.memory_space<vmem>>, vector<1x64xi32>
    %53 = vector.broadcast %51 : vector<64x1xi32> to vector<64x64xi32>
    %54 = vector.broadcast %52 : vector<1x64xi32> to vector<64x64xi32>
    %55 = arith.cmpi eq, %53, %54 : vector<64x64xi32>
    %cst_21 = arith.constant 0.000000e+00 : f32
    %cst_22 = arith.constant -1.000000e+09 : f32
    %56 = vector.broadcast %cst_21 : f32 to vector<64x64xf32>
    %57 = vector.broadcast %cst_22 : f32 to vector<64x64xf32>
    %58 = arith.select %55, %56, %57 : vector<64x64xi1>, vector<64x64xf32>
    %59 = arith.truncf %50 : vector<64x32xf32> to vector<64x32xbf16>
    %c0_23 = arith.constant 0 : index
    %c0_24 = arith.constant 0 : index
    %60 = vector.load %arg8[%c0_23, %c0_24] : memref<32x96xbf16, #tpu.memory_space<vmem>>, vector<32x96xbf16>
    %cst_25 = arith.constant dense<0.000000e+00> : vector<64x96xf32>
    %61 = tpu.matmul %59, %60, %cst_25 {dimension_numbers = #tpu.dot_dimension_numbers<[1], [0], [0], [1], [0, 0, 1, 1], [], []>} : vector<64x32xbf16>, vector<32x96xbf16>, vector<64x96xf32> -> vector<64x96xf32>
    %62 = vector.extract_strided_slice %61 {offsets = [0, 0], sizes = [64, 32], strides = [1, 1]} : vector<64x96xf32> to vector<64x32xf32>
    %63 = vector.extract_strided_slice %0 {offsets = [2, 0], sizes = [1, 32], strides = [1, 1]} : vector<13x64xf32> to vector<1x32xf32>
    %64 = vector.broadcast %63 : vector<1x32xf32> to vector<64x32xf32>
    %65 = arith.addf %62, %64 : vector<64x32xf32>
    %66 = vector.extract_strided_slice %61 {offsets = [0, 32], sizes = [64, 32], strides = [1, 1]} : vector<64x96xf32> to vector<64x32xf32>
    %67 = vector.extract_strided_slice %0 {offsets = [3, 0], sizes = [1, 32], strides = [1, 1]} : vector<13x64xf32> to vector<1x32xf32>
    %68 = vector.broadcast %67 : vector<1x32xf32> to vector<64x32xf32>
    %69 = arith.addf %66, %68 : vector<64x32xf32>
    %70 = vector.extract_strided_slice %61 {offsets = [0, 64], sizes = [64, 32], strides = [1, 1]} : vector<64x96xf32> to vector<64x32xf32>
    %71 = vector.extract_strided_slice %0 {offsets = [4, 0], sizes = [1, 32], strides = [1, 1]} : vector<13x64xf32> to vector<1x32xf32>
    %72 = vector.broadcast %71 : vector<1x32xf32> to vector<64x32xf32>
    %73 = arith.addf %70, %72 : vector<64x32xf32>
    %c0_26 = arith.constant 0 : index
    %c0_27 = arith.constant 0 : index
    %74 = vector.load %arg9[%c0_26, %c0_27] : memref<32x32xbf16, #tpu.memory_space<vmem>>, vector<32x32xbf16>
    %cst_28 = arith.constant 0.000000e+00 : f32
    %75 = vector.broadcast %cst_28 : f32 to vector<64x32xf32>
    %76 = vector.extract_strided_slice %65 {offsets = [0, 0], sizes = [64, 16], strides = [1, 1]} : vector<64x32xf32> to vector<64x16xf32>
    %77 = arith.truncf %76 : vector<64x16xf32> to vector<64x16xbf16>
    %78 = vector.extract_strided_slice %69 {offsets = [0, 0], sizes = [64, 16], strides = [1, 1]} : vector<64x32xf32> to vector<64x16xf32>
    %79 = arith.truncf %78 : vector<64x16xf32> to vector<64x16xbf16>
    %80 = vector.extract_strided_slice %73 {offsets = [0, 0], sizes = [64, 16], strides = [1, 1]} : vector<64x32xf32> to vector<64x16xf32>
    %81 = arith.truncf %80 : vector<64x16xf32> to vector<64x16xbf16>
    "tpu.trace_start"() <{level = 10 : i32, message = "qd,kd->qk"}> : () -> ()
    %cst_29 = arith.constant dense<0.000000e+00> : vector<64x64xf32>
    %82 = tpu.matmul %77, %79, %cst_29 {dimension_numbers = #tpu.dot_dimension_numbers<[1], [1], [0], [0], [0, 0, 1, 0], [], []>} : vector<64x16xbf16>, vector<64x16xbf16>, vector<64x64xf32> -> vector<64x64xf32>
    "tpu.trace_stop"() : () -> ()
    %cst_30 = arith.constant 2.500000e-01 : f32
    %83 = vector.broadcast %cst_30 : f32 to vector<64x64xf32>
    %84 = arith.mulf %82, %83 : vector<64x64xf32>
    %85 = arith.addf %84, %58 : vector<64x64xf32>
    %cst_31 = arith.constant dense<0xFF800000> : vector<64xf32>
    %86 = vector.multi_reduction <maximumf>, %85, %cst_31 [1] : vector<64x64xf32> to vector<64xf32>
    %87 = vector.shape_cast %86 : vector<64xf32> to vector<64x1xf32>
    %88 = vector.broadcast %87 : vector<64x1xf32> to vector<64x64xf32>
    %89 = arith.subf %85, %88 : vector<64x64xf32>
    %90 = math.exp %89 : vector<64x64xf32>
    %cst_32 = arith.constant dense<0.000000e+00> : vector<64xf32>
    %91 = vector.multi_reduction <add>, %90, %cst_32 [1] : vector<64x64xf32> to vector<64xf32>
    %92 = vector.shape_cast %91 : vector<64xf32> to vector<64x1xf32>
    %93 = vector.broadcast %92 : vector<64x1xf32> to vector<64x64xf32>
    %94 = arith.divf %90, %93 : vector<64x64xf32>
    %95 = arith.truncf %94 : vector<64x64xf32> to vector<64x64xbf16>
    %cst_33 = arith.constant dense<0.000000e+00> : vector<64x16xf32>
    %96 = tpu.matmul %95, %81, %cst_33 {dimension_numbers = #tpu.dot_dimension_numbers<[1], [0], [0], [1], [0, 0, 1, 1], [], []>} : vector<64x64xbf16>, vector<64x16xbf16>, vector<64x16xf32> -> vector<64x16xf32>
    %97 = arith.truncf %96 : vector<64x16xf32> to vector<64x16xbf16>
    %98 = vector.extract_strided_slice %74 {offsets = [0, 0], sizes = [16, 32], strides = [1, 1]} : vector<32x32xbf16> to vector<16x32xbf16>
    %cst_34 = arith.constant dense<0.000000e+00> : vector<64x32xf32>
    %99 = tpu.matmul %97, %98, %cst_34 {dimension_numbers = #tpu.dot_dimension_numbers<[1], [0], [0], [1], [0, 0, 1, 1], [], []>} : vector<64x16xbf16>, vector<16x32xbf16>, vector<64x32xf32> -> vector<64x32xf32>
    %100 = arith.addf %75, %99 : vector<64x32xf32>
    %101 = vector.extract_strided_slice %65 {offsets = [0, 16], sizes = [64, 16], strides = [1, 1]} : vector<64x32xf32> to vector<64x16xf32>
    %102 = arith.truncf %101 : vector<64x16xf32> to vector<64x16xbf16>
    %103 = vector.extract_strided_slice %69 {offsets = [0, 16], sizes = [64, 16], strides = [1, 1]} : vector<64x32xf32> to vector<64x16xf32>
    %104 = arith.truncf %103 : vector<64x16xf32> to vector<64x16xbf16>
    %105 = vector.extract_strided_slice %73 {offsets = [0, 16], sizes = [64, 16], strides = [1, 1]} : vector<64x32xf32> to vector<64x16xf32>
    %106 = arith.truncf %105 : vector<64x16xf32> to vector<64x16xbf16>
    "tpu.trace_start"() <{level = 10 : i32, message = "qd,kd->qk"}> : () -> ()
    %cst_35 = arith.constant dense<0.000000e+00> : vector<64x64xf32>
    %107 = tpu.matmul %102, %104, %cst_35 {dimension_numbers = #tpu.dot_dimension_numbers<[1], [1], [0], [0], [0, 0, 1, 0], [], []>} : vector<64x16xbf16>, vector<64x16xbf16>, vector<64x64xf32> -> vector<64x64xf32>
    "tpu.trace_stop"() : () -> ()
    %cst_36 = arith.constant 2.500000e-01 : f32
    %108 = vector.broadcast %cst_36 : f32 to vector<64x64xf32>
    %109 = arith.mulf %107, %108 : vector<64x64xf32>
    %110 = arith.addf %109, %58 : vector<64x64xf32>
    %cst_37 = arith.constant dense<0xFF800000> : vector<64xf32>
    %111 = vector.multi_reduction <maximumf>, %110, %cst_37 [1] : vector<64x64xf32> to vector<64xf32>
    %112 = vector.shape_cast %111 : vector<64xf32> to vector<64x1xf32>
    %113 = vector.broadcast %112 : vector<64x1xf32> to vector<64x64xf32>
    %114 = arith.subf %110, %113 : vector<64x64xf32>
    %115 = math.exp %114 : vector<64x64xf32>
    %cst_38 = arith.constant dense<0.000000e+00> : vector<64xf32>
    %116 = vector.multi_reduction <add>, %115, %cst_38 [1] : vector<64x64xf32> to vector<64xf32>
    %117 = vector.shape_cast %116 : vector<64xf32> to vector<64x1xf32>
    %118 = vector.broadcast %117 : vector<64x1xf32> to vector<64x64xf32>
    %119 = arith.divf %115, %118 : vector<64x64xf32>
    %120 = arith.truncf %119 : vector<64x64xf32> to vector<64x64xbf16>
    %cst_39 = arith.constant dense<0.000000e+00> : vector<64x16xf32>
    %121 = tpu.matmul %120, %106, %cst_39 {dimension_numbers = #tpu.dot_dimension_numbers<[1], [0], [0], [1], [0, 0, 1, 1], [], []>} : vector<64x64xbf16>, vector<64x16xbf16>, vector<64x16xf32> -> vector<64x16xf32>
    %122 = arith.truncf %121 : vector<64x16xf32> to vector<64x16xbf16>
    %123 = vector.extract_strided_slice %74 {offsets = [16, 0], sizes = [16, 32], strides = [1, 1]} : vector<32x32xbf16> to vector<16x32xbf16>
    %cst_40 = arith.constant dense<0.000000e+00> : vector<64x32xf32>
    %124 = tpu.matmul %122, %123, %cst_40 {dimension_numbers = #tpu.dot_dimension_numbers<[1], [0], [0], [1], [0, 0, 1, 1], [], []>} : vector<64x16xbf16>, vector<16x32xbf16>, vector<64x32xf32> -> vector<64x32xf32>
    %125 = arith.addf %100, %124 : vector<64x32xf32>
    %126 = vector.extract_strided_slice %0 {offsets = [5, 0], sizes = [1, 32], strides = [1, 1]} : vector<13x64xf32> to vector<1x32xf32>
    %127 = vector.broadcast %126 : vector<1x32xf32> to vector<64x32xf32>
    %128 = arith.addf %125, %127 : vector<64x32xf32>
    %129 = arith.addf %50, %128 : vector<64x32xf32>
    %130 = vector.extract_strided_slice %0 {offsets = [6, 0], sizes = [1, 32], strides = [1, 1]} : vector<13x64xf32> to vector<1x32xf32>
    %131 = vector.extract_strided_slice %0 {offsets = [7, 0], sizes = [1, 32], strides = [1, 1]} : vector<13x64xf32> to vector<1x32xf32>
    %cst_41 = arith.constant dense<0.000000e+00> : vector<64xf32>
    %132 = vector.multi_reduction <add>, %129, %cst_41 [1] : vector<64x32xf32> to vector<64xf32>
    %133 = vector.shape_cast %132 : vector<64xf32> to vector<64x1xf32>
    %cst_42 = arith.constant 3.200000e+01 : f32
    %134 = vector.broadcast %cst_42 : f32 to vector<64x1xf32>
    %135 = arith.divf %133, %134 : vector<64x1xf32>
    %136 = vector.broadcast %135 : vector<64x1xf32> to vector<64x32xf32>
    %137 = arith.subf %129, %136 : vector<64x32xf32>
    %138 = arith.mulf %137, %137 : vector<64x32xf32>
    %cst_43 = arith.constant dense<0.000000e+00> : vector<64xf32>
    %139 = vector.multi_reduction <add>, %138, %cst_43 [1] : vector<64x32xf32> to vector<64xf32>
    %140 = vector.shape_cast %139 : vector<64xf32> to vector<64x1xf32>
    %cst_44 = arith.constant 3.200000e+01 : f32
    %141 = vector.broadcast %cst_44 : f32 to vector<64x1xf32>
    %142 = arith.divf %140, %141 : vector<64x1xf32>
    %143 = vector.broadcast %135 : vector<64x1xf32> to vector<64x32xf32>
    %144 = arith.subf %129, %143 : vector<64x32xf32>
    %cst_45 = arith.constant 9.99999996E-13 : f32
    %145 = vector.broadcast %cst_45 : f32 to vector<64x1xf32>
    %146 = arith.addf %142, %145 : vector<64x1xf32>
    %147 = math.rsqrt %146 : vector<64x1xf32>
    %148 = vector.broadcast %147 : vector<64x1xf32> to vector<64x32xf32>
    %149 = arith.mulf %144, %148 : vector<64x32xf32>
    %150 = vector.broadcast %130 : vector<1x32xf32> to vector<64x32xf32>
    %151 = arith.mulf %149, %150 : vector<64x32xf32>
    %152 = vector.broadcast %131 : vector<1x32xf32> to vector<64x32xf32>
    %153 = arith.addf %151, %152 : vector<64x32xf32>
    %154 = arith.truncf %153 : vector<64x32xf32> to vector<64x32xbf16>
    %c0_46 = arith.constant 0 : index
    %c0_47 = arith.constant 0 : index
    %155 = vector.load %arg10[%c0_46, %c0_47] : memref<32x64xbf16, #tpu.memory_space<vmem>>, vector<32x64xbf16>
    %cst_48 = arith.constant dense<0.000000e+00> : vector<64x64xf32>
    %156 = tpu.matmul %154, %155, %cst_48 {dimension_numbers = #tpu.dot_dimension_numbers<[1], [0], [0], [1], [0, 0, 1, 1], [], []>} : vector<64x32xbf16>, vector<32x64xbf16>, vector<64x64xf32> -> vector<64x64xf32>
    %157 = vector.extract_strided_slice %0 {offsets = [8, 0], sizes = [1, 64], strides = [1, 1]} : vector<13x64xf32> to vector<1x64xf32>
    %158 = vector.broadcast %157 : vector<1x64xf32> to vector<64x64xf32>
    %159 = arith.addf %156, %158 : vector<64x64xf32>
    %cst_49 = arith.constant 5.000000e-01 : f32
    %160 = vector.broadcast %cst_49 : f32 to vector<64x64xf32>
    %161 = arith.mulf %160, %159 : vector<64x64xf32>
    %cst_50 = arith.constant 4.471500e-02 : f32
    %162 = vector.broadcast %cst_50 : f32 to vector<64x64xf32>
    %163 = arith.mulf %162, %159 : vector<64x64xf32>
    %164 = arith.mulf %163, %159 : vector<64x64xf32>
    %165 = arith.mulf %164, %159 : vector<64x64xf32>
    %166 = arith.addf %159, %165 : vector<64x64xf32>
    %cst_51 = arith.constant 0.797884583 : f32
    %167 = vector.broadcast %cst_51 : f32 to vector<64x64xf32>
    %168 = arith.mulf %167, %166 : vector<64x64xf32>
    %169 = math.tanh %168 : vector<64x64xf32>
    %cst_52 = arith.constant 1.000000e+00 : f32
    %170 = vector.broadcast %cst_52 : f32 to vector<64x64xf32>
    %171 = arith.addf %170, %169 : vector<64x64xf32>
    %172 = arith.mulf %161, %171 : vector<64x64xf32>
    %173 = arith.truncf %172 : vector<64x64xf32> to vector<64x64xbf16>
    %c0_53 = arith.constant 0 : index
    %c0_54 = arith.constant 0 : index
    %174 = vector.load %arg11[%c0_53, %c0_54] : memref<64x32xbf16, #tpu.memory_space<vmem>>, vector<64x32xbf16>
    %cst_55 = arith.constant dense<0.000000e+00> : vector<64x32xf32>
    %175 = tpu.matmul %173, %174, %cst_55 {dimension_numbers = #tpu.dot_dimension_numbers<[1], [0], [0], [1], [0, 0, 1, 1], [], []>} : vector<64x64xbf16>, vector<64x32xbf16>, vector<64x32xf32> -> vector<64x32xf32>
    %176 = vector.extract_strided_slice %0 {offsets = [9, 0], sizes = [1, 32], strides = [1, 1]} : vector<13x64xf32> to vector<1x32xf32>
    %177 = vector.broadcast %176 : vector<1x32xf32> to vector<64x32xf32>
    %178 = arith.addf %175, %177 : vector<64x32xf32>
    %179 = arith.addf %153, %178 : vector<64x32xf32>
    %180 = vector.extract_strided_slice %0 {offsets = [10, 0], sizes = [1, 32], strides = [1, 1]} : vector<13x64xf32> to vector<1x32xf32>
    %181 = vector.extract_strided_slice %0 {offsets = [11, 0], sizes = [1, 32], strides = [1, 1]} : vector<13x64xf32> to vector<1x32xf32>
    %cst_56 = arith.constant dense<0.000000e+00> : vector<64xf32>
    %182 = vector.multi_reduction <add>, %179, %cst_56 [1] : vector<64x32xf32> to vector<64xf32>
    %183 = vector.shape_cast %182 : vector<64xf32> to vector<64x1xf32>
    %cst_57 = arith.constant 3.200000e+01 : f32
    %184 = vector.broadcast %cst_57 : f32 to vector<64x1xf32>
    %185 = arith.divf %183, %184 : vector<64x1xf32>
    %186 = vector.broadcast %185 : vector<64x1xf32> to vector<64x32xf32>
    %187 = arith.subf %179, %186 : vector<64x32xf32>
    %188 = arith.mulf %187, %187 : vector<64x32xf32>
    %cst_58 = arith.constant dense<0.000000e+00> : vector<64xf32>
    %189 = vector.multi_reduction <add>, %188, %cst_58 [1] : vector<64x32xf32> to vector<64xf32>
    %190 = vector.shape_cast %189 : vector<64xf32> to vector<64x1xf32>
    %cst_59 = arith.constant 3.200000e+01 : f32
    %191 = vector.broadcast %cst_59 : f32 to vector<64x1xf32>
    %192 = arith.divf %190, %191 : vector<64x1xf32>
    %193 = vector.broadcast %185 : vector<64x1xf32> to vector<64x32xf32>
    %194 = arith.subf %179, %193 : vector<64x32xf32>
    %cst_60 = arith.constant 9.99999996E-13 : f32
    %195 = vector.broadcast %cst_60 : f32 to vector<64x1xf32>
    %196 = arith.addf %192, %195 : vector<64x1xf32>
    %197 = math.rsqrt %196 : vector<64x1xf32>
    %198 = vector.broadcast %197 : vector<64x1xf32> to vector<64x32xf32>
    %199 = arith.mulf %194, %198 : vector<64x32xf32>
    %200 = vector.broadcast %180 : vector<1x32xf32> to vector<64x32xf32>
    %201 = arith.mulf %199, %200 : vector<64x32xf32>
    %202 = vector.broadcast %181 : vector<1x32xf32> to vector<64x32xf32>
    %203 = arith.addf %201, %202 : vector<64x32xf32>
    %204 = tpu.iota {dimensions = array<i32: 0>} : vector<8x64xi32>
    %205 = tpu.iota {dimensions = array<i32: 1>} : vector<8x64xi32>
    %c8_i32 = arith.constant 8 : i32
    %206 = vector.broadcast %c8_i32 : i32 to vector<8x64xi32>
    %207 = arith.muli %204, %206 : vector<8x64xi32>
    %208 = arith.cmpi eq, %205, %207 : vector<8x64xi32>
    %209 = arith.extui %208 : vector<8x64xi1> to vector<8x64xi32>
    %210 = arith.sitofp %209 : vector<8x64xi32> to vector<8x64xf32>
    %cst_61 = arith.constant dense<0.000000e+00> : vector<8x32xf32>
    %211 = tpu.matmul %210, %203, %cst_61 {dimension_numbers = #tpu.dot_dimension_numbers<[1], [0], [0], [1], [0, 0, 1, 1], [], []>} : vector<8x64xf32>, vector<64x32xf32>, vector<8x32xf32> -> vector<8x32xf32>
    %212 = arith.truncf %211 : vector<8x32xf32> to vector<8x32xbf16>
    %c0_62 = arith.constant 0 : index
    %c0_63 = arith.constant 0 : index
    %213 = vector.load %arg12[%c0_62, %c0_63] : memref<32x32xbf16, #tpu.memory_space<vmem>>, vector<32x32xbf16>
    %cst_64 = arith.constant dense<0.000000e+00> : vector<8x32xf32>
    %214 = tpu.matmul %212, %213, %cst_64 {dimension_numbers = #tpu.dot_dimension_numbers<[1], [0], [0], [1], [0, 0, 1, 1], [], []>} : vector<8x32xbf16>, vector<32x32xbf16>, vector<8x32xf32> -> vector<8x32xf32>
    %215 = vector.extract_strided_slice %0 {offsets = [12, 0], sizes = [1, 32], strides = [1, 1]} : vector<13x64xf32> to vector<1x32xf32>
    %216 = vector.broadcast %215 : vector<1x32xf32> to vector<8x32xf32>
    %217 = arith.addf %214, %216 : vector<8x32xf32>
    %218 = math.tanh %217 : vector<8x32xf32>
    %c0_65 = arith.constant 0 : index
    %c0_66 = arith.constant 0 : index
    %219 = vector.load %arg14[%c0_65, %c0_66] : memref<8x32xf32, #tpu.memory_space<vmem>>, vector<8x32xf32>
    tpu.vector_store %arg14[%c0_65, %c0_66], %218 {strides = array<i32>} : memref<8x32xf32, #tpu.memory_space<vmem>>, vector<8x32xf32>,
    return
  }
  func.func @transform_0(%arg0: i32) -> (i32, i32) {
    %c0_i32 = arith.constant 0 : i32
    %c0_i32_0 = arith.constant 0 : i32
    %c0_i32_1 = arith.constant 0 : i32
    return %c0_i32, %c0_i32_0 : i32, i32
  }
  func.func @transform_1(%arg0: i32) -> (i32, i32) {
    %c0_i32 = arith.constant 0 : i32
    %c0_i32_0 = arith.constant 0 : i32
    %c0_i32_1 = arith.constant 0 : i32
    return %c0_i32, %c0_i32_0 : i32, i32
  }
  func.func @transform_2(%arg0: i32) -> (i32, i32) {
    %c0_i32 = arith.constant 0 : i32
    %c0_i32_0 = arith.constant 0 : i32
    %c0_i32_1 = arith.constant 0 : i32
    return %c0_i32, %c0_i32_0 : i32, i32
  }
  func.func @transform_3(%arg0: i32) -> (i32, i32) {
    %c0_i32 = arith.constant 0 : i32
    %c0_i32_0 = arith.constant 0 : i32
    %c0_i32_1 = arith.constant 0 : i32
    return %c0_i32, %c0_i32_0 : i32, i32
  }
  func.func @transform_4(%arg0: i32) -> (i32, i32) {
    %c0_i32 = arith.constant 0 : i32
    %c0_i32_0 = arith.constant 0 : i32
    %c0_i32_1 = arith.constant 0 : i32
    return %c0_i32, %c0_i32_0 : i32, i32
  }
  func.func @transform_5(%arg0: i32) -> (i32, i32) {
    %c0_i32 = arith.constant 0 : i32
    %c0_i32_0 = arith.constant 0 : i32
    %c0_i32_1 = arith.constant 0 : i32
    return %c0_i32, %c0_i32_0 : i32, i32
  }
  func.func @transform_6(%arg0: i32) -> (i32, i32) {
    %c0_i32 = arith.constant 0 : i32
    %c0_i32_0 = arith.constant 0 : i32
    %c0_i32_1 = arith.constant 0 : i32
    return %c0_i32, %c0_i32_0 : i32, i32
  }
  func.func @transform_7(%arg0: i32) -> (i32, i32) {
    %c0_i32 = arith.constant 0 : i32
    %c0_i32_0 = arith.constant 0 : i32
    %c0_i32_1 = arith.constant 0 : i32
    return %c0_i32, %c0_i32_0 : i32, i32
  }
  func.func @transform_8(%arg0: i32) -> (i32, i32) {
    %c0_i32 = arith.constant 0 : i32
    %c0_i32_0 = arith.constant 0 : i32
    %c0_i32_1 = arith.constant 0 : i32
    return %c0_i32, %c0_i32_0 : i32, i32
  }
  func.func @transform_9(%arg0: i32) -> (i32, i32) {
    %c0_i32 = arith.constant 0 : i32
    %c0_i32_0 = arith.constant 0 : i32
    %c0_i32_1 = arith.constant 0 : i32
    return %c0_i32, %c0_i32_0 : i32, i32
  }
  func.func @transform_10(%arg0: i32) -> (i32, i32) {
    %c0_i32 = arith.constant 0 : i32
    %c0_i32_0 = arith.constant 0 : i32
    %c0_i32_1 = arith.constant 0 : i32
    return %c0_i32, %c0_i32_0 : i32, i32
  }
  func.func @transform_11(%arg0: i32) -> (i32, i32) {
    %c0_i32 = arith.constant 0 : i32
    %c0_i32_0 = arith.constant 0 : i32
    %c0_i32_1 = arith.constant 0 : i32
    return %c0_i32, %c0_i32_0 : i32, i32
  }
  func.func @transform_12(%arg0: i32) -> (i32, i32) {
    %c0_i32 = arith.constant 0 : i32
    %c0_i32_0 = arith.constant 0 : i32
    %c0_i32_1 = arith.constant 0 : i32
    return %c0_i32, %c0_i32_0 : i32, i32
  }
  func.func @transform_13(%arg0: i32) -> (i32, i32) {
    %c0_i32 = arith.constant 0 : i32
    %c0_i32_0 = arith.constant 0 : i32
    %c0_i32_1 = arith.constant 0 : i32
    return %c0_i32, %c0_i32_0 : i32, i32
  }
}

</mosaic_0001>

<bundles_post_ra>
// kernel: mul.7
= control target key start
LH: loop header
LB: loop body
LE: loop exit
PB: predicated region body
PF: predicated region fallthrough
CT: control target
= control target key end

     0   :  { %s34_s0 = inlined_call_operand.vmem [shape: s32[1,64], index: 0, kind: input, shape index: {}]   ;;  %s35_s1 = inlined_call_operand.vmem [shape: s32[1,64], index: 1, kind: input, shape index: {}]   ;;  %s36_s2 = inlined_call_operand.vmem [shape: s32[1,64], index: 2, kind: output, shape index: {}]  }
   0x1   :  { %v3_v0 = vld [vmem:[%s34_s0] sm:$0x1] }
   0x2   :  { %v4_v1 = vld [vmem:[%s35_s1] sm:$0x1] }
   0x3   :  { %v7_v2 = vmul.u32 %v4_v1, %v3_v0 }
   0x5   :  { %9 = vst [vmem:[%s36_s2] sm:$0x1] %v7_v2 }

// kernel: encoder_for_review_attribute_pair_forward.1
= control target key start
LH: loop header
LB: loop body
LE: loop exit
PB: predicated region body
PF: predicated region fallthrough
CT: control target
= control target key end

     0   :  { %v2771_v2 = vmov 0   ;;  %vm276_vm0 = vcmask 1041408   ;;  %s3618_s0 = inlined_call_operand.vmem [shape: s32[64,1], index: 0, kind: input, shape index: {}]   ;;  %s3619_s1 = inlined_call_operand.vmem [shape: s32[64,1], index: 1, kind: input, shape index: {}]   ;;  %s3620_s2 = inlined_call_operand.vmem [shape: s32[64,1], index: 2, kind: input, shape index: {}]   ;;  %s3621_s3 = inlined_call_operand.vmem [shape: s32[1,64], index: 3, kind: input, shape index: {}]   ;;  %s3622_s4 = inlined_call_operand.vmem [shape: f32[50,32], index: 4, kind: input, shape index: {}]   ;;  %s3623_s5 = inlined_call_operand.vmem [shape: f32[8,32], index: 5, kind: input, shape index: {}]   ;;  %s3624_s6 = inlined_call_operand.vmem [shape: f32[2,32], index: 6, kind: input, shape index: {}]   ;;  %s3625_s7 = inlined_call_operand.vmem [shape: bf16[32,96], index: 7, kind: input, shape index: {}]   ;;  %s3626_s8 = inlined_call_operand.vmem [shape: bf16[32,32], index: 8, kind: input, shape index: {}]   ;;  %s3627_s9 = inlined_call_operand.vmem [shape: bf16[32,64], index: 9, kind: input, shape index: {}]   ;;  %s3628_s10 = inlined_call_operand.vmem [shape: bf16[64,32], index: 10, kind: input, shape index: {}]   ;;  %s3629_s11 = inlined_call_operand.vmem [shape: bf16[32,32], index: 11, kind: input, shape index: {}]   ;;  %s3630_s12 = inlined_call_operand.vmem [shape: f32[13,64], index: 12, kind: input, shape index: {}]   ;;  %s3631_s13 = inlined_call_operand.hbm [shape: f32[8,32], index: 13, kind: output, shape index: {}]  }
   0x1   :  { %v50_v0 = vld [vmem:[%s3618_s0 + $0x10] sm:$0xff]  ;;  %v48_v1 = vld [vmem:[%s3618_s0] sm:$0xff]  ;;  %2605 = vset.pattern.permute.xlu1 %v2771_v2  ;;  %2604 = vset.pattern.permute.xlu0 %v2771_v2  ;;  %v51_v3 = vld [vmem:[%s3618_s0 + $0x18] sm:$0xff] }
   0x2   :  { %65 = vperm.xlu1 %2605, %v50_v0   ;;  %59 = vperm.xlu0 %2604, %v48_v1   ;;  %v49_v4 = vld [vmem:[%s3618_s0 + $0x8] sm:$0xff]  ;;  %v112_v6 = vld [vmem:[%s3622_s4 + $0x30] sm:$0x3]  ;;  %v52_v9 = vld [vmem:[%s3618_s0 + $0x20] sm:$0xff] }
   0x3   :  { %v115_v5 = vld [vmem:[%s3619_s1 + $0x8] sm:$0xff]  ;;  %v114_v11 = vld [vmem:[%s3619_s1] sm:$0xff]  ;;  %2408 = vmatprep.subr.msk.mxu0 %vm276_vm0, %v112_v6  ;;  %v55_v13 = vld [vmem:[%s3618_s0 + $0x38] sm:$0xff] }
   0x4   :  { %v111_v7 = vld [vmem:[%s3622_s4 + $0x28] sm:$0xff]  ;;  %v123_v10 = vcvt.s32.f32 %v115_v5  ;;  %2409 = vmatpush3.msk.msra.mxu0 %vm276_vm0, %v112_v6  ;;  %v110_v12 = vld [vmem:[%s3622_s4 + $0x20] sm:$0xff]  ;;  %v54_v14 = vld [vmem:[%s3618_s0 + $0x30] sm:$0xff]  ;;  %v122_v15 = vcvt.s32.f32 %v114_v11 }
   0x5   :  { %v53_v8 = vld [vmem:[%s3618_s0 + $0x28] sm:$0xff]  ;;  %2410 = vmatprep.subr.mxu0 %v111_v7  ;;  %v109_v17 = vld [vmem:[%s3622_s4 + $0x18] sm:$0xff]  ;;  %v116_v19 = vld [vmem:[%s3619_s1 + $0x10] sm:$0xff] }
   0x6   :  { %68 = vperm.xlu1 %2605, %v51_v3   ;;  %62 = vperm.xlu0 %2604, %v49_v4   ;;  %v132_v16 = vsub.f32 1.0, %v123_v10  ;;  %v117_v18 = vld [vmem:[%s3619_s1 + $0x18] sm:$0xff]  ;;  %v131_v20 = vsub.f32 1.0, %v122_v15  ;;  %v108_v21 = vld [vmem:[%s3622_s4 + $0x10] sm:$0xff]  ;;  %v107_v22 = vld [vmem:[%s3622_s4 + $0x8] sm:$0xff] }
   0x7   :  { %2411 = vmatpush3.msra.mxu0 %v111_v7 }
   0x8   :  { %2412 = vmatprep.subr.mxu0 %v110_v12 }
   0x9   :  { %2413 = vmatpush3.msra.mxu0 %v110_v12 }
   0xa   :  { %74 = vperm.xlu1 %2605, %v53_v8   ;;  %71 = vperm.xlu0 %2604, %v52_v9  }
   0xb   :  { %2414 = vmatprep.subr.mxu0 %v109_v17 }
   0xc   :  { %2415 = vmatpush3.msra.mxu0 %v109_v17 }
   0xd   :  { %2416 = vmatprep.subr.mxu0 %v108_v21 }
   0xe   :  { %80 = vperm.xlu1 %2605, %v55_v13   ;;  %77 = vperm.xlu0 %2604, %v54_v14  }
   0xf   :  { %18 = vsyncpa [#allocation3], 0  ;;  %v125_v23 = vcvt.s32.f32 %v117_v18  ;;  %v124_v24 = vcvt.s32.f32 %v116_v19  ;;  %2417 = vmatpush3.msra.mxu0 %v108_v21  ;;  %v106_v25 = vld [vmem:[%s3622_s4] sm:$0xff]  ;;  %v119_v28 = vld [vmem:[%s3619_s1 + $0x28] sm:$0xff]  ;;  %v56_v40 = vlaneseq  ;;  %vm251_vm1 = vcmask 408576   ;;  %s2773_s24 = smov 32  }
  0x10   :  { %2418 = vmatprep.subr.mxu0 %v107_v22  ;;  %v118_v29 = vld [vmem:[%s3619_s1 + $0x20] sm:$0xff]  ;;  %v127_v30 = vcvt.s32.f32 %v119_v28  ;;  %v121_v34 = vld [vmem:[%s3619_s1 + $0x38] sm:$0xff]  ;;  %v120_v35 = vld [vmem:[%s3619_s1 + $0x30] sm:$0xff]  ;;  %v2772_v44 = vmov 0.0   ;;  %vm393_vm10 = vcmask 261120   ;;  %vm745_vm11 = vcmask 130048  }
  0x11   :  { %2419 = vmatpush3.msra.mxu0 %v107_v22  ;;  %v134_v26 = vsub.f32 1.0, %v125_v23  ;;  %v133_v27 = vsub.f32 1.0, %v124_v24  ;;  %v126_v31 = vcvt.s32.f32 %v118_v29  ;;  %v129_v36 = vcvt.s32.f32 %v121_v34  ;;  %v130_v7 = vld [vmem:[%s3624_s6] sm:$0x3]  ;;  %s2777_s21 = smov 80   ;;  %s2778_s22 = smov 112  }
  0x12   :  { %150 = vperm.xlu1 %2605, %v132_v16   ;;  %145 = vperm.xlu0 %2604, %v131_v20   ;;  %v136_v32 = vsub.f32 1.0, %v127_v30  ;;  %v128_v37 = vcvt.s32.f32 %v120_v35  ;;  %v2921_v41 = vand.u32 127, %v56_v40  ;;  %v2947_v3 = vshrl.u32 %v56_v40, 7  ;;  %v113_v14 = vld [vmem:[%s3623_s5] sm:$0xff] }
  0x13   :  { %2420 = vmatprep.subr.mxu0 %v106_v25  ;;  %v135_v33 = vsub.f32 1.0, %v126_v31  ;;  %v138_v38 = vsub.f32 1.0, %v129_v36 }
  0x14   :  { %2421 = vmatpush3.msra.mxu0 %v106_v25  ;;  %v137_v39 = vsub.f32 1.0, %v128_v37  ;;  %v2950_v4 = vsub.s32 1, %v2947_v3  ;;  %v2953_v6 = vsub.s32 0, %v2947_v3 }
  0x16   :  { %202 = vperm.xlu1 %2605, %v123_v10   ;;  %197 = vperm.xlu0 %2604, %v122_v15   ;;  %v194_v9 = vrot.slane %v130_v7, %v2950_v4  ;;  %v142_v10 = vrot.slane %v130_v7, %v2953_v6 }
  0x1a   :  { %160 = vperm.xlu1 %2605, %v134_v26   ;;  %155 = vperm.xlu0 %2604, %v133_v27  }
  0x1e   :  { %212 = vperm.xlu1 %2605, %v125_v23   ;;  %207 = vperm.xlu0 %2604, %v124_v24  }
  0x22   :  { %170 = vperm.xlu1 %2605, %v136_v32   ;;  %165 = vperm.xlu0 %2604, %v135_v33  }
  0x26   :  { %222 = vperm.xlu1 %2605, %v127_v30   ;;  %217 = vperm.xlu0 %2604, %v126_v31  }
  0x2a   :  { %180 = vperm.xlu1 %2605, %v138_v38   ;;  %175 = vperm.xlu0 %2604, %v137_v39  }
  0x2e   :  { %232 = vperm.xlu1 %2605, %v129_v36   ;;  %227 = vperm.xlu0 %2604, %v128_v37  }
  0x7d   :  { %v66_v42 = vpop.permute.xlu1 %65  ;;  %v60_v43 = vpop.permute.xlu0 %59 }
  0x7e   :  { %vm82_vm2 = vcmp.eq.s32.totalorder %v2921_v41, %v60_v43  ;;  %vm84_vm3 = vcmp.eq.s32.totalorder %v2921_v41, %v66_v42 }
  0x7f   :  { %v2250_v45 = vsel %vm82_vm2, 1.0, %v2772_v44  ;;  %v2252_v48 = vsel %vm84_vm3, 1.0, %v2772_v44  ;;  %vm851_vm2 = vcmask 523264  }
  0x80   :  { %2422 = vmatprep.mubr.msk.f32.mxu0 %vm251_vm1, %v2250_v45 }
  0x81   :  { %v69_v46 = vpop.permute.xlu1 %68  ;;  %v63_v47 = vpop.permute.xlu0 %62 }
  0x82   :  { %vm83_vm4 = vcmp.eq.s32.totalorder %v2921_v41, %v63_v47  ;;  %vm85_vm5 = vcmp.eq.s32.totalorder %v2921_v41, %v69_v46 }
  0x83   :  { %v2251_v49 = vsel %vm83_vm4, 1.0, %v2772_v44  ;;  %v2253_v52 = vsel %vm85_vm5, 1.0, %v2772_v44  ;;  %vm2780_vm5 = vmmov 0  }
  0x84   :  { %2423 = vmatmul.mubr.msk.f32.vlgmr.msra.gmra.mxu0 %vm251_vm1, %v2251_v49 }
  0x85   :  { %v75_v50 = vpop.permute.xlu1 %74  ;;  %v72_v51 = vpop.permute.xlu0 %71  ;;  %2425 = vmatprep.mubr.msk.f32.mxu0 %vm251_vm1, %v2252_v48 }
  0x86   :  { %vm86_vm6 = vcmp.eq.s32.totalorder %v2921_v41, %v72_v51  ;;  %vm87_vm7 = vcmp.eq.s32.totalorder %v2921_v41, %v75_v50 }
  0x87   :  { %v2254_v53 = vsel %vm86_vm6, 1.0, %v2772_v44  ;;  %v2255_v56 = vsel %vm87_vm7, 1.0, %v2772_v44 }
  0x88   :  { %2426 = vmatmul.mubr.msk.f32.gmra.mxu0 %vm251_vm1, %v2253_v52 }
  0x89   :  { %v81_v54 = vpop.permute.xlu1 %80  ;;  %2428 = vmatprep.mubr.msk.f32.mxu0 %vm251_vm1, %v2254_v53  ;;  %v78_v55 = vpop.permute.xlu0 %77 }
  0x8a   :  { %vm88_vm8 = vcmp.eq.s32.totalorder %v2921_v41, %v78_v55  ;;  %vm89_vm9 = vcmp.eq.s32.totalorder %v2921_v41, %v81_v54 }
  0x8b   :  { %v2256_v57 = vsel %vm88_vm8, 1.0, %v2772_v44  ;;  %v2257_v58 = vsel %vm89_vm9, 1.0, %v2772_v44 }
  0x8c   :  { %2429 = vmatmul.mubr.msk.f32.gmra.mxu0 %vm251_vm1, %v2255_v56 }
  0x8d   :  { %2431 = vmatprep.mubr.msk.f32.mxu0 %vm251_vm1, %v2256_v57  ;;  %v146_v59 = vpop.permute.xlu0 %145  ;;  %v151_v60 = vpop.permute.xlu1 %150 }
  0x8e   :  { %v184_v15 = vmul.f32 %v151_v60, %v142_v10  ;;  %v183_v18 = vmul.f32 %v146_v59, %v142_v10 }
  0x90   :  { %2432 = vmatmul.mubr.msk.f32.gmra.mxu0 %vm251_vm1, %v2257_v58 }
  0x91   :  { %v198_v61 = vpop.permute.xlu0 %197  ;;  %v203_v62 = vpop.permute.xlu1 %202 }
  0x92   :  { %v236_v12 = vmul.f32 %v203_v62, %v194_v9  ;;  %v235_v16 = vmul.f32 %v198_v61, %v194_v9 }
  0x94   :  { %v244_v19 = vadd.f32 %v236_v12, %v184_v15  ;;  %v243_v24 = vadd.f32 %v235_v16, %v183_v18 }
  0x95   :  { %v156_v63 = vpop.permute.xlu0 %155  ;;  %v161_v0 = vpop.permute.xlu1 %160 }
  0x96   :  { %v186_v25 = vmul.f32 %v161_v0, %v142_v10  ;;  %v185_v35 = vmul.f32 %v156_v63, %v142_v10 }
  0x99   :  { %v208_v1 = vpop.permute.xlu0 %207  ;;  %v213_v2 = vpop.permute.xlu1 %212 }
  0x9a   :  { %v238_v20 = vmul.f32 %v213_v2, %v194_v9  ;;  %v237_v28 = vmul.f32 %v208_v1, %v194_v9 }
  0x9c   :  { %v246_v31 = vadd.f32 %v238_v20, %v186_v25  ;;  %v245_v43 = vadd.f32 %v237_v28, %v185_v35 }
  0x9d   :  { %v166_v5 = vpop.permute.xlu0 %165  ;;  %v171_v8 = vpop.permute.xlu1 %170 }
  0x9e   :  { %v187_v46 = vmul.f32 %v166_v5, %v142_v10  ;;  %v188_v48 = vmul.f32 %v171_v8, %v142_v10 }
  0xa1   :  { %v218_v11 = vpop.permute.xlu0 %217  ;;  %v223_v13 = vpop.permute.xlu1 %222 }
  0xa2   :  { %v239_v37 = vmul.f32 %v218_v11, %v194_v9  ;;  %v240_v47 = vmul.f32 %v223_v13, %v194_v9 }
  0xa4   :  { %v247_v53 = vadd.f32 %v239_v37, %v187_v46  ;;  %v248_v59 = vadd.f32 %v240_v47, %v188_v48 }
  0xa5   :  { %v176_v21 = vpop.permute.xlu0 %175  ;;  %v181_v29 = vpop.permute.xlu1 %180 }
  0xa6   :  { %v189_v57 = vmul.f32 %v176_v21, %v142_v10  ;;  %v190_v62 = vmul.f32 %v181_v29, %v142_v10 }
  0xa9   :  { %v228_v38 = vpop.permute.xlu0 %227  ;;  %v233_v49 = vpop.permute.xlu1 %232 }
  0xaa   :  { %v241_v50 = vmul.f32 %v228_v38, %v194_v9  ;;  %v242_v60 = vmul.f32 %v233_v49, %v194_v9 }
  0xac   :  { %v249_v63 = vadd.f32 %v241_v50, %v189_v57  ;;  %v250_v11 = vadd.f32 %v242_v60, %v190_v62  ;;  %v2606_v57 = vld [vmem:[%s3625_s7 + $0x8] sm:$0xff]   ;;  %v3021_v60 = vld [vmem:[%s3630_s12] sm:$0xff] }
  0xad   :  { %2434 = vmatprep.subr.bf16.mxu1 %v2606_v57 }
  0xae   :  { %2435 = vmatpush3.bf16.msra.mxu1 %v2606_v57 }
 0x144   :  { %v2424_v17 = vpop.f32.mrf.mxu0 }
 0x145   :  { %v352_v22 = vadd.f32 %v2424_v17, %v113_v14 }
 0x146   :  { %v346_v23 = vpop.f32.mrf.mxu0 }
 0x147   :  { %v347_v26 = vadd.f32 %v346_v23, %v113_v14  ;;  %v386_v27 = vadd.f32 %v352_v22, %v244_v19 }
 0x148   :  { %v2427_v30 = vpop.f32.mrf.mxu0 }
 0x149   :  { %v362_v32 = vadd.f32 %v2427_v30, %v113_v14  ;;  %v397_v33 = vsel %vm393_vm10, %v386_v27, 0.0  ;;  %v385_v34 = vadd.f32 %v347_v26, %v243_v24 }
 0x14a   :  { %398 = vadd.xlane.f32.xlu1 %v397_v33  ;;  %v356_v36 = vpop.f32.mrf.mxu0 }
 0x14b   :  { %v357_v39 = vadd.f32 %v356_v36, %v113_v14  ;;  %v394_v40 = vsel %vm393_vm10, %v385_v34, 0.0  ;;  %v388_v42 = vadd.f32 %v362_v32, %v246_v31 }
 0x14c   :  { %v2430_v45 = vpop.f32.mrf.mxu0  ;;  %395 = vadd.xlane.f32.xlu0 %v394_v40 }
 0x14d   :  { %v387_v52 = vadd.f32 %v357_v39, %v245_v43  ;;  %v372_v54 = vadd.f32 %v2430_v45, %v113_v14  ;;  %v403_v56 = vsel %vm393_vm10, %v388_v42, 0.0 }
 0x14e   :  { %v366_v51 = vpop.f32.mrf.mxu0 }
 0x14f   :  { %v367_v55 = vadd.f32 %v366_v51, %v113_v14  ;;  %v400_v1 = vsel %vm393_vm10, %v387_v52, 0.0  ;;  %v390_v8 = vadd.f32 %v372_v54, %v248_v59  ;;  %v687_v59 = vsub.s32 3, %v2947_v3 }
 0x150   :  { %v2433_v58 = vpop.f32.mrf.mxu0  ;;  %404 = vadd.xlane.f32.xlu0 %v403_v56 }
 0x151   :  { %v389_v61 = vadd.f32 %v367_v55, %v247_v53  ;;  %v382_v2 = vadd.f32 %v2433_v58, %v113_v14  ;;  %v409_v13 = vsel %vm393_vm10, %v390_v8, 0.0  ;;  %v2607_v58 = vld [vmem:[%s3625_s7] sm:$0xff]   ;;  %s2774_s7 = smov 96  }
 0x152   :  { %v376_v0 = vpop.f32.mrf.mxu0  ;;  %2436 = vmatprep.subr.bf16.mxu1 %v2607_v58 }
 0x153   :  { %v377_v5 = vadd.f32 %v376_v0, %v113_v14  ;;  %v406_v7 = vsel %vm393_vm10, %v389_v61, 0.0  ;;  %v392_v9 = vadd.f32 %v382_v2, %v250_v11  ;;  %2437 = vmatpush3.bf16.msra.mxu1 %v2607_v58 }
 0x154   :  { %401 = vadd.xlane.f32.xlu0 %v400_v1  ;;  %407 = vadd.xlane.f32.xlu1 %v406_v7 }
 0x155   :  { %v391_v12 = vadd.f32 %v377_v5, %v249_v63  ;;  %v415_v10 = vsel %vm393_vm10, %v392_v9, 0.0 }
 0x157   :  { %v412_v15 = vsel %vm393_vm10, %v391_v12, 0.0 }
 0x158   :  { %410 = vadd.xlane.f32.xlu0 %v409_v13  ;;  %413 = vadd.xlane.f32.xlu1 %v412_v15 }
 0x15c   :  { %416 = vadd.xlane.f32.xlu0 %v415_v10 }
 0x1d3   :  { %v399_v16 = vpop.xlane.xlu1 %398 }
 0x1d4   :  { %v420_v17 = vmul.f32 0.03125, %v399_v16 }
 0x1d5   :  { %v396_v14 = vpop.xlane.xlu0 %395 }
 0x1d6   :  { %v2971_v18 = vsub.f32 %v386_v27, %v420_v17  ;;  %v419_v19 = vmul.f32 0.03125, %v396_v14 }
 0x1d8   :  { %v2973_v20 = vsub.f32 %v385_v34, %v419_v19  ;;  %v436_v21 = vmul.f32 %v2971_v18, %v2971_v18 }
 0x1d9   :  { %v405_v22 = vpop.xlane.xlu0 %404 }
 0x1da   :  { %v422_v23 = vmul.f32 0.03125, %v405_v22  ;;  %v446_v24 = vsel %vm393_vm10, %v436_v21, 0.0  ;;  %v435_v25 = vmul.f32 %v2973_v20, %v2973_v20  ;;  %v502_v21 = vrot.slane %v3021_v60, %v2953_v6 }
 0x1db   :  { %447 = vadd.xlane.f32.xlu0 %v446_v24 }
 0x1dc   :  { %v2980_v26 = vsub.f32 %v388_v42, %v422_v23  ;;  %v443_v28 = vsel %vm393_vm10, %v435_v25, 0.0 }
 0x1dd   :  { %v408_v27 = vpop.xlane.xlu1 %407  ;;  %444 = vadd.xlane.f32.xlu1 %v443_v28  ;;  %v402_v29 = vpop.xlane.xlu0 %401 }
 0x1de   :  { %v423_v30 = vmul.f32 0.03125, %v408_v27  ;;  %v421_v31 = vmul.f32 0.03125, %v402_v29  ;;  %v438_v32 = vmul.f32 %v2980_v26, %v2980_v26 }
 0x1e0   :  { %v2985_v33 = vsub.f32 %v389_v61, %v423_v30  ;;  %v2987_v34 = vsub.f32 %v387_v52, %v421_v31  ;;  %v452_v35 = vsel %vm393_vm10, %v438_v32, 0.0  ;;  %v688_v61 = vrot.slane %v3021_v60, %v687_v59 }
 0x1e1   :  { %v414_v36 = vpop.xlane.xlu1 %413  ;;  %453 = vadd.xlane.f32.xlu0 %v452_v35  ;;  %v411_v37 = vpop.xlane.xlu0 %410  ;;  %v514_v30 = vrot.slane %v3021_v60, %v2950_v4 }
 0x1e2   :  { %v425_v38 = vmul.f32 0.03125, %v414_v36  ;;  %v424_v39 = vmul.f32 0.03125, %v411_v37  ;;  %v437_v40 = vmul.f32 %v2987_v34, %v2987_v34  ;;  %v439_v46 = vmul.f32 %v2985_v33, %v2985_v33 }
 0x1e4   :  { %v2992_v42 = vsub.f32 %v391_v12, %v425_v38  ;;  %v2994_v43 = vsub.f32 %v390_v8, %v424_v39  ;;  %v449_v45 = vsel %vm393_vm10, %v437_v40, 0.0  ;;  %v455_v51 = vsel %vm393_vm10, %v439_v46, 0.0 }
 0x1e5   :  { %450 = vadd.xlane.f32.xlu1 %v449_v45  ;;  %v417_v47 = vpop.xlane.xlu0 %416 }
 0x1e6   :  { %v426_v48 = vmul.f32 0.03125, %v417_v47  ;;  %v440_v49 = vmul.f32 %v2994_v43, %v2994_v43  ;;  %v441_v53 = vmul.f32 %v2992_v42, %v2992_v42 }
 0x1e8   :  { %v3001_v50 = vsub.f32 %v392_v9, %v426_v48  ;;  %v458_v52 = vsel %vm393_vm10, %v440_v49, 0.0  ;;  %v461_v55 = vsel %vm393_vm10, %v441_v53, 0.0 }
 0x1e9   :  { %456 = vadd.xlane.f32.xlu1 %v455_v51  ;;  %459 = vadd.xlane.f32.xlu0 %v458_v52 }
 0x1ea   :  { %v442_v54 = vmul.f32 %v3001_v50, %v3001_v50 }
 0x1ec   :  { %v464_v56 = vsel %vm393_vm10, %v442_v54, 0.0 }
 0x1ed   :  { %462 = vadd.xlane.f32.xlu1 %v461_v55  ;;  %465 = vadd.xlane.f32.xlu0 %v464_v56 }
 0x1fe   :  { %690 = vrot.lane.b32.xlu1 %v688_v61, %s2773_s24  ;;  %s2779_s24 = smov 48  }
 0x264   :  { %v448_v62 = vpop.xlane.xlu0 %447 }
 0x265   :  { %v468_v63 = vmul.f32 0.03125, %v448_v62 }
 0x266   :  { %v445_v0 = vpop.xlane.xlu1 %444 }
 0x267   :  { %v476_v1 = vadd.f32 1e-12, %v468_v63  ;;  %v467_v2 = vmul.f32 0.03125, %v445_v0 }
 0x269   :  { %2618 = vrsqrt.f32 %v476_v1  ;;  %v475_v5 = vadd.f32 1e-12, %v467_v2 }
 0x26a   :  { %v454_v7 = vpop.xlane.xlu0 %453 }
 0x26b   :  { %2620 = vrsqrt.f32 %v475_v5  ;;  %v470_v8 = vmul.f32 0.03125, %v454_v7 }
 0x26d   :  { %v478_v11 = vadd.f32 1e-12, %v470_v8 }
 0x26e   :  { %v451_v12 = vpop.xlane.xlu1 %450 }
 0x26f   :  { %2622 = vrsqrt.f32 %v478_v11  ;;  %v469_v13 = vmul.f32 0.03125, %v451_v12 }
 0x271   :  { %v477_v15 = vadd.f32 1e-12, %v469_v13 }
 0x272   :  { %v457_v9 = vpop.xlane.xlu1 %456  ;;  %v460_v10 = vpop.xlane.xlu0 %459 }
 0x273   :  { %2624 = vrsqrt.f32 %v477_v15  ;;  %v471_v16 = vmul.f32 0.03125, %v457_v9  ;;  %v472_v17 = vmul.f32 0.03125, %v460_v10 }
 0x275   :  { %v479_v14 = vadd.f32 1e-12, %v471_v16  ;;  %v480_v19 = vadd.f32 1e-12, %v472_v17 }
 0x276   :  { %v2619_v22 = vpop.eup %2618  ;;  %v463_v23 = vpop.xlane.xlu1 %462 }
 0x277   :  { %v466_v24 = vpop.xlane.xlu0 %465  ;;  %2626 = vrsqrt.f32 %v479_v14  ;;  %v473_v25 = vmul.f32 0.03125, %v463_v23  ;;  %v492_v27 = vmul.f32 %v2619_v22, %v2971_v18 }
 0x278   :  { %v474_v28 = vmul.f32 0.03125, %v466_v24  ;;  %v2621_v29 = vpop.eup %2620  ;;  %2628 = vrsqrt.f32 %v480_v19 }
 0x279   :  { %v481_v31 = vadd.f32 1e-12, %v473_v25  ;;  %v491_v35 = vmul.f32 %v2621_v29, %v2973_v20  ;;  %v504_v36 = vmul.f32 %v502_v21, %v492_v27 }
 0x27a   :  { %v482_v32 = vadd.f32 1e-12, %v474_v28  ;;  %v691_v14 = vpop.permute.xlu1 %690 }
 0x27b   :  { %2630 = vrsqrt.f32 %v481_v31  ;;  %v503_v37 = vmul.f32 %v502_v21, %v491_v35  ;;  %v3034_v40 = vadd.f32 %v514_v30, %v504_v36 }
 0x27c   :  { %v2623_v38 = vpop.eup %2622  ;;  %2632 = vrsqrt.f32 %v482_v32 }
 0x27d   :  { %v3032_v39 = vadd.f32 %v514_v30, %v503_v37  ;;  %v494_v18 = vmul.f32 %v2623_v38, %v2980_v26  ;;  %v524_v37 = vld [vmem:[%s3620_s2 + $0x8] sm:$0xff]  ;;  %v523_v38 = vld [vmem:[%s3620_s2] sm:$0xff] }
 0x27f   :  { %v576_v45 = vpack.c.bf16 %v3034_v40, %v3032_v39  ;;  %v506_v20 = vmul.f32 %v502_v21, %v494_v18  ;;  %v526_v18 = vld [vmem:[%s3620_s2 + $0x18] sm:$0xff] }
 0x280   :  { %v2625_v46 = vpop.eup %2624 }
 0x281   :  { %2438 = vmatprep.mubr.msk.bf16.mxu1 %vm393_vm10, %v576_v45  ;;  %v493_v47 = vmul.f32 %v2625_v46, %v2987_v34  ;;  %v3043_v53 = vadd.f32 %v514_v30, %v506_v20  ;;  %v525_v45 = vld [vmem:[%s3620_s2 + $0x10] sm:$0xff]  ;;  %v528_v46 = vld [vmem:[%s3620_s2 + $0x28] sm:$0xff]  ;;  %v530_v20 = vld [vmem:[%s3620_s2 + $0x38] sm:$0xff] }
 0x283   :  { %v505_v48 = vmul.f32 %v502_v21, %v493_v47  ;;  %v527_v47 = vld [vmem:[%s3620_s2 + $0x20] sm:$0xff] }
 0x284   :  { %v2627_v49 = vpop.eup %2626 }
 0x285   :  { %v2629_v51 = vpop.eup %2628  ;;  %v3041_v52 = vadd.f32 %v514_v30, %v505_v48  ;;  %v495_v54 = vmul.f32 %v2627_v49, %v2985_v33  ;;  %v529_v48 = vld [vmem:[%s3620_s2 + $0x30] sm:$0xff] }
 0x286   :  { %v496_v26 = vmul.f32 %v2629_v51, %v2994_v43 }
 0x287   :  { %v577_v55 = vpack.c.bf16 %v3043_v53, %v3041_v52  ;;  %v507_v56 = vmul.f32 %v502_v21, %v495_v54 }
 0x288   :  { %v2631_v57 = vpop.eup %2630  ;;  %v508_v58 = vmul.f32 %v502_v21, %v496_v26 }
 0x289   :  { %v2633_v61 = vpop.eup %2632  ;;  %2439 = vmatmul.mubr.msk.bf16.vlgmr.msra.gmra.mxu1 %vm393_vm10, %v577_v55  ;;  %v3050_v34 = vadd.f32 %v514_v30, %v507_v56  ;;  %v497_v62 = vmul.f32 %v2631_v57, %v2992_v42 }
 0x28a   :  { %v3053_v63 = vadd.f32 %v514_v30, %v508_v58  ;;  %v498_v0 = vmul.f32 %v2633_v61, %v3001_v50  ;;  %v675_v50 = vsub.s32 2, %v2947_v3 }
 0x28b   :  { %v509_v33 = vmul.f32 %v502_v21, %v497_v62 }
 0x28c   :  { %v578_v43 = vpack.c.bf16 %v3053_v63, %v3050_v34  ;;  %v510_v1 = vmul.f32 %v502_v21, %v498_v0  ;;  %v3076_v12 = vrot.slane %v3021_v60, %v675_v50  ;;  %v3151_v0 = vld [vmem:[%s3621_s3] ss:$0 sm:$0xff]  ;;  %s2776_s3 = smov 64  }
 0x28d   :  { %v3058_v2 = vadd.f32 %v514_v30, %v509_v33 }
 0x28e   :  { %2442 = vmatprep.mubr.msk.bf16.mxu1 %vm393_vm10, %v578_v43  ;;  %v3061_v5 = vadd.f32 %v514_v30, %v510_v1  ;;  %v2775_v1 = vmov -1e+09  }
 0x290   :  { %v579_v7 = vpack.c.bf16 %v3061_v5, %v3058_v2 }
 0x292   :  { %2443 = vmatmul.mubr.msk.bf16.gmra.mxu1 %vm393_vm10, %v579_v7 }
 0x349   :  { %v3066_v42 = vpop.f32.mrf.mxu1 }
 0x34a   :  { %v695_v32 = vadd.f32 %v3066_v42, %v691_v14 }
 0x34b   :  { %v3069_v8 = vpop.f32.mrf.mxu1 }
 0x34c   :  { %v677_v15 = vadd.f32 %v3076_v12, %v3069_v8  ;;  %v693_v29 = vadd.f32 %v691_v14, %v3069_v8 }
 0x34d   :  { %v3071_v11 = vpop.f32.mrf.mxu1 }
 0x34e   :  { %v696_v30 = vadd.f32 %v3071_v11, %v691_v14  ;;  %v680_v43 = vadd.f32 %v3071_v11, %v3076_v12 }
 0x34f   :  { %v3078_v13 = vpop.f32.mrf.mxu1 }
 0x350   :  { %v678_v9 = vadd.f32 %v3076_v12, %v3078_v13  ;;  %v694_v24 = vadd.f32 %v691_v14, %v3078_v13  ;;  %v3113_v36 = vpack.c.bf16 %v696_v30, %v695_v32 }
 0x352   :  { %v3084_v10 = vpack.c.bf16 %v678_v9, %v677_v15  ;;  %v3086_v16 = vpop.f32.mrf.mxu1  ;;  %v3110_v35 = vpack.c.bf16 %v694_v24, %v693_v29  ;;  %v679_v9 = vadd.f32 %v3066_v42, %v3076_v12 }
 0x353   :  { %v699_v21 = vadd.f32 %v3086_v16, %v691_v14  ;;  %v683_v29 = vadd.f32 %v3086_v16, %v3076_v12 }
 0x354   :  { %v3088_v17 = vpop.f32.mrf.mxu1  ;;  %2454 = vmatprep.mubr.msk.bf16.mxu1 %vm745_vm11, %v3084_v10 }
 0x355   :  { %v697_v25 = vadd.f32 %v691_v14, %v3088_v17 }
 0x356   :  { %v3092_v19 = vpop.f32.mrf.mxu1 }
 0x357   :  { %v700_v22 = vadd.f32 %v3092_v19, %v691_v14 }
 0x358   :  { %v3096_v23 = vpop.f32.mrf.mxu1 }
 0x359   :  { %v698_v28 = vadd.f32 %v691_v14, %v3096_v23  ;;  %v3101_v27 = vpack.c.bf16 %v700_v22, %v699_v21  ;;  %v682_v15 = vadd.f32 %v3076_v12, %v3096_v23  ;;  %v681_v21 = vadd.f32 %v3076_v12, %v3088_v17 }
 0x35a   :  { %v3165_v22 = vpack.c.bf16 %v680_v43, %v679_v9 }
 0x35b   :  { %743 = vrot.lane.b32.xlu0 %v3101_v27, %s2774_s7  ;;  %v3106_v31 = vpack.c.bf16 %v698_v28, %v697_v25  ;;  %v3169_v25 = vpack.c.bf16 %v682_v15, %v681_v21  ;;  %v684_v28 = vadd.f32 %v3092_v19, %v3076_v12 }
 0x35d   :  { %741 = vrot.lane.b32.xlu1 %v3106_v31, %s2774_s7  ;;  %v3179_v30 = vpack.c.bf16 %v684_v28, %v683_v29 }
 0x35f   :  { %737 = vrot.lane.b32.xlu0 %v3110_v35, %s2774_s7 }
 0x361   :  { %739 = vrot.lane.b32.xlu1 %v3113_v36, %s2774_s7 }
 0x363   :  { %536 = vperm.xlu0 %2604, %v524_v37  }
 0x365   :  { %533 = vperm.xlu1 %2605, %v523_v38  }
 0x367   :  { %542 = vperm.xlu0 %2604, %v526_v18  }
 0x369   :  { %539 = vperm.xlu1 %2605, %v525_v45  }
 0x36b   :  { %548 = vperm.xlu0 %2604, %v528_v46  }
 0x36d   :  { %545 = vperm.xlu1 %2605, %v527_v47  }
 0x36f   :  { %554 = vperm.xlu0 %2604, %v530_v20  }
 0x371   :  { %551 = vperm.xlu1 %2605, %v529_v48  }
 0x3cd   :  { %v744_v49 = vpop.permute.xlu0 %743 }
 0x3ce   :  { %v768_v51 = vsel %vm745_vm11, %v744_v49, 0  ;;  %2585 = vmatprep.subr.msk.bf16.mxu1 %vm745_vm11, %v744_v49 }
 0x3cf   :  { %2447 = vmatpush3.bf16.xpose.msra.mxu1 %v768_v51  ;;  %v742_v54 = vpop.permute.xlu1 %741 }
 0x3d0   :  { %2586 = vmatprep.subr.msk.bf16.mxu1 %vm745_vm11, %v742_v54  ;;  %v765_v26 = vsel %vm745_vm11, %v742_v54, 0 }
 0x3d1   :  { %v738_v56 = vpop.permute.xlu0 %737 }
 0x3d2   :  { %v759_v62 = vsel %vm745_vm11, %v738_v56, 0 }
 0x3d3   :  { %v740_v55 = vpop.permute.xlu1 %739 }
 0x3d4   :  { %v762_v57 = vsel %vm745_vm11, %v740_v55, 0 }
 0x3d7   :  { %2449 = vmatpush3.bf16.xpose.msra.mxu1 %v765_v26 }
 0x3d8   :  { %2587 = vmatprep.subr.msk.bf16.mxu1 %vm745_vm11, %v740_v55 }
 0x3de   :  { %v537_v58 = vpop.permute.xlu0 %536 }
 0x3df   :  { %2451 = vmatpush3.bf16.xpose.msra.mxu1 %v762_v57  ;;  %vm561_vm0 = vcmp.eq.s32.totalorder %v537_v58, %v3151_v0 }
 0x3e0   :  { %2588 = vmatprep.subr.msk.bf16.mxu1 %vm745_vm11, %v738_v56  ;;  %v534_v32 = vpop.permute.xlu1 %533  ;;  %v3199_v58 = vsel %vm561_vm0, 0.0, %v2775_v1 }
 0x3e1   :  { %vm560_vm14 = vcmp.eq.s32.totalorder %v534_v32, %v3151_v0 }
 0x3e2   :  { %v543_v61 = vpop.permute.xlu0 %542  ;;  %v3185_v47 = vsel %vm560_vm14, 0.0, %v2775_v1 }
 0x3e3   :  { %vm563_vm15 = vcmp.eq.s32.totalorder %v543_v61, %v3151_v0 }
 0x3e4   :  { %v540_v37 = vpop.permute.xlu1 %539  ;;  %v3191_v49 = vsel %vm563_vm15, 0.0, %v2775_v1 }
 0x3e5   :  { %vm562_vm1 = vcmp.eq.s32.totalorder %v540_v37, %v3151_v0 }
 0x3e6   :  { %v549_v33 = vpop.permute.xlu0 %548 }
 0x3e7   :  { %vm565_vm12 = vcmp.eq.s32.totalorder %v549_v33, %v3151_v0  ;;  %2453 = vmatpush3.bf16.xpose.msra.mxu1 %v759_v62  ;;  %v3204_v33 = vsel %vm562_vm1, 0.0, %v2775_v1 }
 0x3e8   :  { %v3156_v7 = vsel %vm565_vm12, 0.0, %v2775_v1  ;;  %v546_v18 = vpop.permute.xlu1 %545 }
 0x3e9   :  { %vm564_vm4 = vcmp.eq.s32.totalorder %v546_v18, %v3151_v0 }
 0x3ea   :  { %v555_v14 = vpop.permute.xlu0 %554 }
 0x3eb   :  { %vm567_vm13 = vcmp.eq.s32.totalorder %v555_v14, %v3151_v0 }
 0x3ec   :  { %v3167_v24 = vsel %vm567_vm13, 0.0, %v2775_v1  ;;  %v552_v54 = vpop.permute.xlu1 %551 }
 0x3ed   :  { %vm566_vm3 = vcmp.eq.s32.totalorder %v552_v54, %v3151_v0 }
 0x3ee   :  { %2455 = vmatmul.mubr.msk.bf16.vlgmr.msra.gmra.mxu1 %vm745_vm11, %v3165_v22  ;;  %v3214_v28 = vsel %vm566_vm3, 0.0, %v2775_v1 }
 0x3ef   :  { %2458 = vmatprep.mubr.msk.bf16.mxu1 %vm745_vm11, %v3169_v25 }
 0x3f6   :  { %2459 = vmatmul.mubr.msk.bf16.gmra.mxu1 %vm745_vm11, %v3179_v30 }
 0x4ae   :  { %v2456_v38 = vpop.f32.mrf.mxu1 }
 0x4af   :  { %v837_v26 = vmul.f32 0.25, %v2456_v38  ;;  %v3220_v38 = vsel %vm564_vm4, 0.0, %v2775_v1 }
 0x4b0   :  { %v804_v45 = vpop.f32.mrf.mxu1 }
 0x4b1   :  { %v835_v46 = vmul.f32 0.25, %v804_v45  ;;  %v3212_v14 = vadd.f32 %v837_v26, %v3204_v33 }
 0x4b2   :  { %v2457_v20 = vpop.f32.mrf.mxu1 }
 0x4b3   :  { %v838_v12 = vmul.f32 0.25, %v2457_v20  ;;  %v3189_v48 = vadd.f32 %v835_v46, %v3185_v47  ;;  %v858_v32 = vsel %vm851_vm2, %v3212_v14, -inf }
 0x4b4   :  { %v807_v51 = vpop.f32.mrf.mxu1 }
 0x4b5   :  { %v836_v55 = vmul.f32 0.25, %v807_v51  ;;  %v852_v56 = vsel %vm851_vm2, %v3189_v48, -inf  ;;  %v3197_v57 = vadd.f32 %v838_v12, %v3191_v49  ;;  %v703_v12 = vsub.s32 4, %v2947_v3 }
 0x4b6   :  { %853 = vmax.xlane.f32.xlu1 %v852_v56  ;;  %v2460_v61 = vpop.f32.mrf.mxu1 }
 0x4b7   :  { %v3202_v62 = vadd.f32 %v836_v55, %v3199_v58  ;;  %v841_v43 = vmul.f32 0.25, %v2460_v61  ;;  %v861_v9 = vsel %vm851_vm2, %v3197_v57, -inf  ;;  %v704_v0 = vrot.slane %v3021_v60, %v703_v12 }
 0x4b8   :  { %v820_v21 = vpop.f32.mrf.mxu1 }
 0x4b9   :  { %v855_v15 = vsel %vm851_vm2, %v3202_v62, -inf  ;;  %v839_v29 = vmul.f32 0.25, %v820_v21  ;;  %v849_v37 = vadd.f32 %v841_v43, %v3214_v28 }
 0x4ba   :  { %856 = vmax.xlane.f32.xlu0 %v855_v15  ;;  %862 = vmax.xlane.f32.xlu1 %v861_v9 }
 0x4bb   :  { %v870_v45 = vsel %vm851_vm2, %v849_v37, -inf  ;;  %v847_v46 = vadd.f32 %v839_v29, %v3220_v38 }
 0x4bd   :  { %v864_v20 = vsel %vm851_vm2, %v847_v46, -inf }
 0x4be   :  { %859 = vmax.xlane.f32.xlu0 %v858_v32 }
 0x4c2   :  { %871 = vmax.xlane.f32.xlu0 %v870_v45  ;;  %v2461_v45 = vpop.f32.mrf.mxu1 }
 0x4c6   :  { %865 = vmax.xlane.f32.xlu0 %v864_v20  ;;  %v842_v20 = vmul.f32 0.25, %v2461_v45 }
 0x4dc   :  { %706 = vrot.lane.b32.xlu0 %v704_v0, %s2776_s3  ;;  %v823_v0 = vpop.f32.mrf.mxu1 }
 0x543   :  { %v857_v18 = vpop.xlane.xlu0 %856 }
 0x547   :  { %v860_v51 = vpop.xlane.xlu0 %859 }
 0x54b   :  { %v872_v1 = vpop.xlane.xlu0 %871 }
 0x54f   :  { %v866_v54 = vpop.xlane.xlu0 %865 }
 0x550   :  { %v880_v32 = vsub.f32 %v847_v46, %v866_v54 }
 0x553   :  { %v707_v26 = vpop.permute.xlu0 %706 }
 0x554   :  { %v715_v55 = vadd.f32 %v3086_v16, %v707_v26  ;;  %v716_v56 = vadd.f32 %v3092_v19, %v707_v26  ;;  %v713_v61 = vadd.f32 %v707_v26, %v3088_v17  ;;  %v714_v43 = vadd.f32 %v707_v26, %v3096_v23 }
 0x555   :  { %v711_v60 = vadd.f32 %v3066_v42, %v707_v26  ;;  %v712_v21 = vadd.f32 %v3071_v11, %v707_v26  ;;  %v709_v16 = vadd.f32 %v707_v26, %v3069_v8  ;;  %v710_v17 = vadd.f32 %v707_v26, %v3078_v13 }
 0x556   :  { %v3233_v15 = vpack.c.bf16 %v716_v56, %v715_v55  ;;  %v3235_v9 = vpack.c.bf16 %v714_v43, %v713_v61  ;;  %v882_v23 = vsub.f32 %v849_v37, %v872_v1  ;;  %v892_v11 = vmul.f32 1.442695, %v880_v32  ;;  %v854_v61 = vpop.xlane.xlu1 %853 }
 0x557   :  { %v3241_v29 = vpack.c.bf16 %v712_v21, %v711_v60  ;;  %v3246_v19 = vpack.c.bf16 %v710_v17, %v709_v16  ;;  %v840_v55 = vmul.f32 0.25, %v823_v0  ;;  %v850_v8 = vadd.f32 %v842_v20, %v3167_v24 }
 0x558   :  { %954 = vrot.lane.b32.xlu1 %v3233_v15, %s2776_s3  ;;  %952 = vrot.lane.b32.xlu0 %v3235_v9, %s2776_s3  ;;  %v896_v42 = vmul.f32 1.442695, %v882_v23  ;;  %v878_v43 = vsub.f32 %v3212_v14, %v860_v51  ;;  %v876_v60 = vsub.f32 %v3189_v48, %v854_v61 }
 0x559   :  { %v873_v13 = vsel %vm851_vm2, %v850_v8, -inf  ;;  %v848_v26 = vadd.f32 %v840_v55, %v3156_v7 }
 0x55a   :  { %2634 = vpow2.f32 %v896_v42  ;;  %v888_v21 = vmul.f32 1.442695, %v878_v43  ;;  %v863_v16 = vpop.xlane.xlu1 %862  ;;  %v884_v17 = vmul.f32 1.442695, %v876_v60  ;;  %v877_v42 = vsub.f32 %v3202_v62, %v857_v18 }
 0x55b   :  { %2636 = vpow2.f32 %v892_v11  ;;  %v867_v46 = vsel %vm851_vm2, %v848_v26, -inf  ;;  %v879_v23 = vsub.f32 %v3197_v57, %v863_v16 }
 0x55c   :  { %950 = vrot.lane.b32.xlu0 %v3241_v29, %s2776_s3  ;;  %2638 = vpow2.f32 %v888_v21  ;;  %v886_v11 = vmul.f32 1.442695, %v877_v42 }
 0x55d   :  { %2640 = vpow2.f32 %v884_v17  ;;  %v890_v32 = vmul.f32 1.442695, %v879_v23 }
 0x55f   :  { %2642 = vpow2.f32 %v890_v32 }
 0x560   :  { %948 = vrot.lane.b32.xlu0 %v3246_v19, %s2776_s3  ;;  %2644 = vpow2.f32 %v886_v11 }
 0x567   :  { %v3252_v56 = vpop.eup %2634 }
 0x568   :  { %v918_v37 = vsel %vm851_vm2, %v3252_v56, 0.0  ;;  %v3257_v1 = vpop.eup %2636 }
 0x569   :  { %v912_v54 = vsel %vm851_vm2, %v3257_v1, 0.0  ;;  %v3267_v45 = vpop.eup %2638 }
 0x56a   :  { %v2641_v14 = vpop.eup %2640 }
 0x56b   :  { %v900_v48 = vsel %vm851_vm2, %v2641_v14, 0.0 }
 0x56c   :  { %v2643_v51 = vpop.eup %2642 }
 0x56d   :  { %v909_v57 = vsel %vm851_vm2, %v2643_v51, 0.0  ;;  %v2645_v20 = vpop.eup %2644 }
 0x56e   :  { %v903_v62 = vsel %vm851_vm2, %v2645_v20, 0.0 }
 0x57c   :  { %874 = vmax.xlane.f32.xlu1 %v873_v13 }
 0x57f   :  { %919 = vadd.xlane.f32.xlu0 %v918_v37 }
 0x580   :  { %868 = vmax.xlane.f32.xlu1 %v867_v46 }
 0x583   :  { %913 = vadd.xlane.f32.xlu0 %v912_v54 }
 0x591   :  { %1059 = vrot.lane.b32.xlu1 %v3101_v27, %s2777_s21  ;;  %v906_v27 = vsel %vm851_vm2, %v3267_v45, 0.0 }
 0x5b5   :  { %907 = vadd.xlane.f32.xlu1 %v906_v27 }
 0x5b9   :  { %901 = vadd.xlane.f32.xlu1 %v900_v48 }
 0x5bd   :  { %910 = vadd.xlane.f32.xlu1 %v909_v57 }
 0x5c1   :  { %904 = vadd.xlane.f32.xlu1 %v903_v62 }
 0x5ca   :  { %v955_v18 = vpop.permute.xlu1 %954  ;;  %v953_v0 = vpop.permute.xlu0 %952 }
 0x5cb   :  { %2462 = vmatprep.subr.bf16.mxu0 %v955_v18 }
 0x5cc   :  { %2463 = vmatpush3.bf16.msra.mxu0 %v955_v18 }
 0x5cd   :  { %2464 = vmatprep.subr.bf16.mxu0 %v953_v0 }
 0x5ce   :  { %v951_v55 = vpop.permute.xlu0 %950 }
 0x5d0   :  { %2465 = vmatpush3.bf16.msra.mxu0 %v953_v0 }
 0x5d1   :  { %2466 = vmatprep.subr.bf16.mxu0 %v951_v55 }
 0x5d2   :  { %1057 = vrot.lane.b32.xlu1 %v3106_v31, %s2777_s21  ;;  %v949_v13 = vpop.permute.xlu0 %948 }
 0x5d4   :  { %2467 = vmatpush3.bf16.msra.mxu0 %v951_v55 }
 0x5d5   :  { %2468 = vmatprep.subr.bf16.mxu0 %v949_v13 }
 0x5d8   :  { %2469 = vmatpush3.bf16.msra.mxu0 %v949_v13 }
 0x605   :  { %v875_v37 = vpop.xlane.xlu1 %874 }
 0x606   :  { %v883_v46 = vsub.f32 %v850_v8, %v875_v37 }
 0x608   :  { %v898_v54 = vmul.f32 1.442695, %v883_v46  ;;  %v2608_v46 = vld [vmem:[%s3626_s8] sm:$0xff]  }
 0x609   :  { %v869_v61 = vpop.xlane.xlu1 %868 }
 0x60a   :  { %2646 = vpow2.f32 %v898_v54  ;;  %v881_v43 = vsub.f32 %v848_v26, %v869_v61 }
 0x60c   :  { %v894_v60 = vmul.f32 1.442695, %v881_v43 }
 0x60d   :  { %v1060_v21 = vpop.permute.xlu1 %1059 }
 0x60e   :  { %2648 = vpow2.f32 %v894_v60  ;;  %2589 = vmatprep.subr.msk.bf16.mxu0 %vm745_vm11, %v1060_v21 }
 0x617   :  { %v2647_v16 = vpop.eup %2646 }
 0x618   :  { %v921_v17 = vsel %vm851_vm2, %v2647_v16, 0.0 }
 0x619   :  { %922 = vadd.xlane.f32.xlu0 %v921_v17 }
 0x61b   :  { %v2649_v31 = vpop.eup %2648 }
 0x61c   :  { %v915_v23 = vsel %vm851_vm2, %v2649_v31, 0.0 }
 0x61d   :  { %916 = vadd.xlane.f32.xlu1 %v915_v23 }
 0x62e   :  { %1053 = vrot.lane.b32.xlu1 %v3110_v35, %s2777_s21 }
 0x62f   :  { %1055 = vrot.lane.b32.xlu0 %v3113_v36, %s2777_s21 }
 0x632   :  { %1047 = vrot.lane.b32.xlu1 %v3165_v22, %s2778_s22 }
 0x633   :  { %1045 = vrot.lane.b32.xlu0 %v3084_v10, %s2778_s22 }
 0x636   :  { %1051 = vrot.lane.b32.xlu1 %v3179_v30, %s2778_s22 }
 0x637   :  { %1049 = vrot.lane.b32.xlu0 %v3169_v25, %s2778_s22  ;;  %v1083_v25 = vsel %vm745_vm11, %v1060_v21, 0 }
 0x63e   :  { %v908_v8 = vpop.xlane.xlu1 %907 }
 0x642   :  { %v902_v26 = vpop.xlane.xlu1 %901 }
 0x646   :  { %v911_v42 = vpop.xlane.xlu1 %910 }
 0x647   :  { %2650 = vrcp.f32 %v911_v42 }
 0x648   :  { %2652 = vrcp.f32 %v902_v26 }
 0x649   :  { %2654 = vrcp.f32 %v908_v8 }
 0x64a   :  { %v905_v32 = vpop.xlane.xlu1 %904 }
 0x64b   :  { %2656 = vrcp.f32 %v905_v32 }
 0x64e   :  { %v1058_v18 = vpop.permute.xlu1 %1057 }
 0x64f   :  { %v1080_v0 = vsel %vm745_vm11, %v1058_v18, 0 }
 0x654   :  { %v2651_v35 = vpop.eup %2650 }
 0x655   :  { %v2653_v11 = vpop.eup %2652  ;;  %v931_v48 = vmul.f32 %v2651_v35, %v2643_v51  ;;  %v920_v51 = vpop.xlane.xlu0 %919 }
 0x656   :  { %v2655_v36 = vpop.eup %2654  ;;  %v925_v22 = vmul.f32 %v2653_v11, %v2641_v14 }
 0x657   :  { %v929_v10 = vmul.f32 %v2655_v36, %v3267_v45 }
 0x658   :  { %v2657_v27 = vpop.eup %2656 }
 0x659   :  { %v927_v57 = vmul.f32 %v2657_v27, %v2645_v20  ;;  %v941_v62 = vpack.c.bf16 %v931_v48, %v929_v10  ;;  %v914_v14 = vpop.xlane.xlu0 %913 }
 0x65b   :  { %v940_v30 = vpack.c.bf16 %v927_v57, %v925_v22 }
 0x65d   :  { %2470 = vmatprep.mubr.msk.bf16.mxu0 %vm851_vm2, %v940_v30 }
 0x65e   :  { %2471 = vmatmul.mubr.msk.bf16.vlgmr.msra.gmra.mxu0 %vm851_vm2, %v941_v62 }
 0x65f   :  { %2479 = vmatpush3.bf16.xpose.msra.mxu0 %v1083_v25 }
 0x660   :  { %2590 = vmatprep.subr.msk.bf16.mxu0 %vm745_vm11, %v1058_v18 }
 0x667   :  { %2481 = vmatpush3.bf16.xpose.msra.mxu0 %v1080_v0 }
 0x6a2   :  { %v923_v20 = vpop.xlane.xlu0 %922 }
 0x6a3   :  { %2658 = vrcp.f32 %v923_v20 }
 0x6a4   :  { %2660 = vrcp.f32 %v914_v14 }
 0x6a5   :  { %2662 = vrcp.f32 %v920_v51 }
 0x6a6   :  { %v1056_v45 = vpop.permute.xlu0 %1055  ;;  %v917_v55 = vpop.xlane.xlu1 %916 }
 0x6a7   :  { %v1077_v13 = vsel %vm745_vm11, %v1056_v45, 0  ;;  %2664 = vrcp.f32 %v917_v55  ;;  %2591 = vmatprep.subr.msk.bf16.mxu0 %vm745_vm11, %v1056_v45 }
 0x6a8   :  { %2483 = vmatpush3.bf16.xpose.msra.mxu0 %v1077_v13 }
 0x6aa   :  { %v1054_v37 = vpop.permute.xlu1 %1053  ;;  %v1046_v35 = vpop.permute.xlu0 %1045 }
 0x6ab   :  { %2592 = vmatprep.subr.msk.bf16.mxu0 %vm745_vm11, %v1054_v37  ;;  %v1074_v54 = vsel %vm745_vm11, %v1054_v37, 0 }
 0x6ae   :  { %v1048_v11 = vpop.permute.xlu1 %1047  ;;  %v1050_v36 = vpop.permute.xlu0 %1049 }
 0x6b0   :  { %2485 = vmatpush3.bf16.xpose.msra.mxu0 %v1074_v54  ;;  %v2659_v61 = vpop.eup %2658 }
 0x6b1   :  { %2520 = vmatprep.subr.bf16.mxu0 %v2608_v46  ;;  %v2661_v43 = vpop.eup %2660  ;;  %v939_v17 = vmul.f32 %v2659_v61, %v2647_v16 }
 0x6b2   :  { %v2663_v60 = vpop.eup %2662  ;;  %v933_v23 = vmul.f32 %v2661_v43, %v3257_v1  ;;  %v1052_v1 = vpop.permute.xlu1 %1051 }
 0x6b3   :  { %v937_v26 = vmul.f32 %v2663_v60, %v3252_v56 }
 0x6b4   :  { %v2665_v21 = vpop.eup %2664 }
 0x6b5   :  { %v935_v8 = vmul.f32 %v2665_v21, %v2649_v31  ;;  %v943_v32 = vpack.c.bf16 %v939_v17, %v937_v26 }
 0x6b7   :  { %v942_v42 = vpack.c.bf16 %v935_v8, %v933_v23 }
 0x6b9   :  { %2474 = vmatprep.mubr.msk.bf16.mxu0 %vm851_vm2, %v942_v42 }
 0x6ba   :  { %2475 = vmatmul.mubr.msk.bf16.gmra.mxu0 %vm851_vm2, %v943_v32 }
 0x6bb   :  { %2486 = vmatprep.mubr.msk.bf16.mxu0 %vm745_vm11, %v1046_v35 }
 0x6c2   :  { %2487 = vmatmul.mubr.msk.bf16.vlgmr.msra.gmra.mxu0 %vm745_vm11, %v1048_v11 }
 0x6c3   :  { %2490 = vmatprep.mubr.msk.bf16.mxu0 %vm745_vm11, %v1050_v36  ;;  %2521 = vmatpush3.bf16.msra.mxu0 %v2608_v46 }
 0x6ca   :  { %2491 = vmatmul.mubr.msk.bf16.gmra.mxu0 %vm745_vm11, %v1052_v1 }
 0x71e   :  { %v2472_v56 = vpop.f32.mrf.mxu0 }
 0x720   :  { %v1006_v16 = vpop.f32.mrf.mxu0 }
 0x722   :  { %v2473_v31 = vpop.f32.mrf.mxu0 }
 0x723   :  { %v1038_v22 = vpack.c.bf16 %v2473_v31, %v2472_v56 }
 0x724   :  { %v1009_v27 = vpop.f32.mrf.mxu0 }
 0x725   :  { %v1037_v48 = vpack.c.bf16 %v1009_v27, %v1006_v16 }
 0x727   :  { %2522 = vmatprep.mubr.msk.bf16.mxu0 %vm745_vm11, %v1037_v48 }
 0x728   :  { %2523 = vmatmul.mubr.msk.bf16.vlgmr.msra.gmra.mxu0 %vm745_vm11, %v1038_v22 }
 0x77a   :  { %v2476_v57 = vpop.f32.mrf.mxu0 }
 0x77c   :  { %v1022_v10 = vpop.f32.mrf.mxu0 }
 0x77e   :  { %v2477_v30 = vpop.f32.mrf.mxu0 }
 0x77f   :  { %v1040_v18 = vpack.c.bf16 %v2477_v30, %v2476_v57 }
 0x780   :  { %v1025_v62 = vpop.f32.mrf.mxu0 }
 0x781   :  { %v1039_v25 = vpack.c.bf16 %v1025_v62, %v1022_v10 }
 0x782   :  { %v2488_v0 = vpop.f32.mrf.mxu0 }
 0x783   :  { %2526 = vmatprep.mubr.msk.bf16.mxu0 %vm745_vm11, %v1039_v25  ;;  %v1152_v14 = vmul.f32 0.25, %v2488_v0 }
 0x784   :  { %v1119_v51 = vpop.f32.mrf.mxu0  ;;  %2527 = vmatmul.mubr.msk.bf16.gmra.mxu0 %vm745_vm11, %v1040_v18 }
 0x785   :  { %v1150_v20 = vmul.f32 0.25, %v1119_v51  ;;  %v1160_v61 = vadd.f32 %v1152_v14, %v3204_v33 }
 0x786   :  { %v2489_v45 = vpop.f32.mrf.mxu0 }
 0x787   :  { %v1158_v55 = vadd.f32 %v1150_v20, %v3185_v47  ;;  %v1153_v13 = vmul.f32 0.25, %v2489_v45  ;;  %v1172_v26 = vsel %vm851_vm2, %v1160_v61, -inf }
 0x788   :  { %v1122_v37 = vpop.f32.mrf.mxu0 }
 0x789   :  { %v1151_v46 = vmul.f32 0.25, %v1122_v37  ;;  %v1166_v54 = vsel %vm851_vm2, %v1158_v55, -inf  ;;  %v1161_v17 = vadd.f32 %v1153_v13, %v3191_v49 }
 0x78a   :  { %1167 = vmax.xlane.f32.xlu0 %v1166_v54  ;;  %v2492_v43 = vpop.f32.mrf.mxu0 }
 0x78b   :  { %v1159_v60 = vadd.f32 %v1151_v46, %v3199_v58  ;;  %v1156_v23 = vmul.f32 0.25, %v2492_v43  ;;  %v1175_v33 = vsel %vm851_vm2, %v1161_v17, -inf }
 0x78c   :  { %v1135_v21 = vpop.f32.mrf.mxu0 }
 0x78d   :  { %v1154_v8 = vmul.f32 0.25, %v1135_v21  ;;  %v1169_v47 = vsel %vm851_vm2, %v1159_v60, -inf  ;;  %v1164_v49 = vadd.f32 %v1156_v23, %v3214_v28 }
 0x78e   :  { %1173 = vmax.xlane.f32.xlu0 %v1172_v26  ;;  %1170 = vmax.xlane.f32.xlu1 %v1169_v47  ;;  %v2493_v42 = vpop.f32.mrf.mxu0 }
 0x78f   :  { %v1162_v32 = vadd.f32 %v1154_v8, %v3220_v38  ;;  %v1157_v11 = vmul.f32 0.25, %v2493_v42  ;;  %v1184_v56 = vsel %vm851_vm2, %v1164_v49, -inf }
 0x790   :  { %v1138_v35 = vpop.f32.mrf.mxu0 }
 0x791   :  { %v1155_v36 = vmul.f32 0.25, %v1138_v35  ;;  %v1178_v58 = vsel %vm851_vm2, %v1162_v32, -inf  ;;  %v1165_v31 = vadd.f32 %v1157_v11, %v3167_v24 }
 0x792   :  { %1176 = vmax.xlane.f32.xlu0 %v1175_v33  ;;  %1179 = vmax.xlane.f32.xlu1 %v1178_v58 }
 0x793   :  { %v1163_v1 = vadd.f32 %v1155_v36, %v3156_v7  ;;  %v1187_v38 = vsel %vm851_vm2, %v1165_v31, -inf }
 0x795   :  { %v1181_v16 = vsel %vm851_vm2, %v1163_v1, -inf }
 0x796   :  { %1185 = vmax.xlane.f32.xlu1 %v1184_v56  ;;  %1182 = vmax.xlane.f32.xlu0 %v1181_v16 }
 0x79a   :  { %1188 = vmax.xlane.f32.xlu0 %v1187_v38 }
 0x7a7   :  { %1264 = vrot.lane.b32.xlu1 %v3233_v15, %s2779_s24 }
 0x813   :  { %v1168_v28 = vpop.xlane.xlu0 %1167 }
 0x814   :  { %v1190_v27 = vsub.f32 %v1158_v55, %v1168_v28 }
 0x816   :  { %v1198_v57 = vmul.f32 1.442695, %v1190_v27 }
 0x817   :  { %v1174_v48 = vpop.xlane.xlu0 %1173  ;;  %v1171_v22 = vpop.xlane.xlu1 %1170 }
 0x818   :  { %v1192_v7 = vsub.f32 %v1160_v61, %v1174_v48  ;;  %v1191_v30 = vsub.f32 %v1159_v60, %v1171_v22 }
 0x81a   :  { %v1202_v10 = vmul.f32 1.442695, %v1192_v7  ;;  %v1200_v18 = vmul.f32 1.442695, %v1191_v30 }
 0x81b   :  { %v1177_v62 = vpop.xlane.xlu0 %1176  ;;  %v1180_v25 = vpop.xlane.xlu1 %1179 }
 0x81c   :  { %2666 = vpow2.f32 %v1202_v10  ;;  %v1193_v24 = vsub.f32 %v1161_v17, %v1177_v62  ;;  %v1194_v51 = vsub.f32 %v1162_v32, %v1180_v25 }
 0x81d   :  { %2668 = vpow2.f32 %v1198_v57 }
 0x81e   :  { %v1204_v0 = vmul.f32 1.442695, %v1193_v24  ;;  %v1206_v13 = vmul.f32 1.442695, %v1194_v51 }
 0x81f   :  { %v1183_v14 = vpop.xlane.xlu0 %1182  ;;  %v1186_v20 = vpop.xlane.xlu1 %1185 }
 0x820   :  { %2670 = vpow2.f32 %v1204_v0  ;;  %v1196_v15 = vsub.f32 %v1164_v49, %v1186_v20  ;;  %v1195_v45 = vsub.f32 %v1163_v1, %v1183_v14  ;;  %v2609_v0 = vld [vmem:[%s3626_s8 + $0x8] sm:$0xff]  }
 0x821   :  { %2672 = vpow2.f32 %v1200_v18 }
 0x822   :  { %v1210_v55 = vmul.f32 1.442695, %v1196_v15  ;;  %v1208_v61 = vmul.f32 1.442695, %v1195_v45 }
 0x823   :  { %v1189_v37 = vpop.xlane.xlu0 %1188  ;;  %v1265_v46 = vpop.permute.xlu1 %1264 }
 0x824   :  { %v1197_v54 = vsub.f32 %v1165_v31, %v1189_v37  ;;  %2494 = vmatprep.subr.bf16.mxu1 %v1265_v46  ;;  %2674 = vpow2.f32 %v1210_v55 }
 0x825   :  { %2495 = vmatpush3.bf16.msra.mxu1 %v1265_v46  ;;  %2676 = vpow2.f32 %v1206_v13 }
 0x826   :  { %v1212_v43 = vmul.f32 1.442695, %v1197_v54 }
 0x828   :  { %2678 = vpow2.f32 %v1212_v43 }
 0x829   :  { %v3330_v60 = vpop.eup %2666  ;;  %2680 = vpow2.f32 %v1208_v61 }
 0x82a   :  { %v1220_v21 = vsel %vm851_vm2, %v3330_v60, 0.0  ;;  %v2669_v17 = vpop.eup %2668 }
 0x82b   :  { %1221 = vadd.xlane.f32.xlu1 %v1220_v21  ;;  %v1214_v8 = vsel %vm851_vm2, %v2669_v17, 0.0 }
 0x82d   :  { %v2671_v23 = vpop.eup %2670 }
 0x82e   :  { %v1223_v26 = vsel %vm851_vm2, %v2671_v23, 0.0  ;;  %v2673_v47 = vpop.eup %2672 }
 0x82f   :  { %1215 = vadd.xlane.f32.xlu1 %v1214_v8  ;;  %1224 = vadd.xlane.f32.xlu0 %v1223_v26  ;;  %v1217_v32 = vsel %vm851_vm2, %v2673_v47, 0.0 }
 0x831   :  { %v3336_v42 = vpop.eup %2674 }
 0x832   :  { %v1232_v35 = vsel %vm851_vm2, %v3336_v42, 0.0  ;;  %v2677_v33 = vpop.eup %2676 }
 0x833   :  { %1218 = vadd.xlane.f32.xlu0 %v1217_v32  ;;  %1233 = vadd.xlane.f32.xlu1 %v1232_v35  ;;  %v1226_v49 = vsel %vm851_vm2, %v2677_v33, 0.0 }
 0x835   :  { %v2679_v11 = vpop.eup %2678 }
 0x836   :  { %v1235_v36 = vsel %vm851_vm2, %v2679_v11, 0.0  ;;  %v2681_v58 = vpop.eup %2680 }
 0x837   :  { %1236 = vadd.xlane.f32.xlu0 %v1235_v36  ;;  %1227 = vadd.xlane.f32.xlu1 %v1226_v49  ;;  %v1229_v1 = vsel %vm851_vm2, %v2681_v58, 0.0 }
 0x83b   :  { %1230 = vadd.xlane.f32.xlu0 %v1229_v1  ;;  %v1519_v1 = vsub.s32 5, %v2947_v3 }
 0x848   :  { %1260 = vrot.lane.b32.xlu1 %v3241_v29, %s2779_s24 }
 0x84c   :  { %1258 = vrot.lane.b32.xlu1 %v3246_v19, %s2779_s24 }
 0x851   :  { %1262 = vrot.lane.b32.xlu0 %v3235_v9, %s2779_s24 }
 0x8b4   :  { %v1222_v56 = vpop.xlane.xlu1 %1221 }
 0x8b8   :  { %v1225_v16 = vpop.xlane.xlu0 %1224  ;;  %v1216_v31 = vpop.xlane.xlu1 %1215 }
 0x8b9   :  { %2682 = vrcp.f32 %v1216_v31  ;;  %v3367_v31 = vld [vmem:[%s3630_s12] sm:$0xff] }
 0x8bc   :  { %v1219_v38 = vpop.xlane.xlu0 %1218  ;;  %v1234_v28 = vpop.xlane.xlu1 %1233 }
 0x8bd   :  { %2684 = vrcp.f32 %v1219_v38  ;;  %v1520_v38 = vrot.slane %v3367_v31, %v1519_v1 }
 0x8be   :  { %2686 = vrcp.f32 %v1225_v16 }
 0x8bf   :  { %2688 = vrcp.f32 %v1222_v56 }
 0x8c0   :  { %v1237_v27 = vpop.xlane.xlu0 %1236  ;;  %v1228_v48 = vpop.xlane.xlu1 %1227 }
 0x8c1   :  { %2690 = vrcp.f32 %v1228_v48 }
 0x8c4   :  { %v1231_v22 = vpop.xlane.xlu0 %1230  ;;  %v1261_v19 = vpop.permute.xlu1 %1260 }
 0x8c5   :  { %2692 = vrcp.f32 %v1231_v22 }
 0x8c6   :  { %2694 = vrcp.f32 %v1237_v27  ;;  %v2683_v29 = vpop.eup %2682 }
 0x8c7   :  { %2696 = vrcp.f32 %v1234_v28  ;;  %v1239_v57 = vmul.f32 %v2683_v29, %v2669_v17 }
 0x8c8   :  { %v1263_v7 = vpop.permute.xlu0 %1262  ;;  %v1259_v24 = vpop.permute.xlu1 %1258 }
 0x8c9   :  { %2496 = vmatprep.subr.bf16.mxu1 %v1263_v7 }
 0x8ca   :  { %v2685_v9 = vpop.eup %2684  ;;  %2497 = vmatpush3.bf16.msra.mxu1 %v1263_v7 }
 0x8cb   :  { %2498 = vmatprep.subr.bf16.mxu1 %v1261_v19  ;;  %v1241_v10 = vmul.f32 %v2685_v9, %v2673_v47  ;;  %v2687_v30 = vpop.eup %2686 }
 0x8cc   :  { %v2689_v25 = vpop.eup %2688  ;;  %v1245_v18 = vmul.f32 %v2687_v30, %v2671_v23 }
 0x8cd   :  { %v1254_v62 = vpack.c.bf16 %v1241_v10, %v1239_v57  ;;  %v1243_v14 = vmul.f32 %v2689_v25, %v3330_v60 }
 0x8ce   :  { %2499 = vmatpush3.bf16.msra.mxu1 %v1261_v19  ;;  %v2691_v51 = vpop.eup %2690 }
 0x8cf   :  { %2500 = vmatprep.subr.bf16.mxu1 %v1259_v24  ;;  %2502 = vmatprep.mubr.msk.bf16.mxu1 %vm851_vm2, %v1254_v62  ;;  %v1255_v15 = vpack.c.bf16 %v1245_v18, %v1243_v14  ;;  %v1247_v45 = vmul.f32 %v2691_v51, %v2677_v33 }
 0x8d2   :  { %v2693_v20 = vpop.eup %2692  ;;  %2501 = vmatpush3.bf16.msra.mxu1 %v1259_v24 }
 0x8d3   :  { %v1249_v55 = vmul.f32 %v2693_v20, %v2681_v58  ;;  %2510 = vmatprep.subr.bf16.mxu1 %v2609_v0  ;;  %v2695_v13 = vpop.eup %2694 }
 0x8d4   :  { %v2697_v46 = vpop.eup %2696  ;;  %v1253_v54 = vmul.f32 %v2695_v13, %v2679_v11 }
 0x8d5   :  { %2503 = vmatmul.mubr.msk.bf16.vlgmr.msra.gmra.mxu1 %vm851_vm2, %v1255_v15  ;;  %v1256_v37 = vpack.c.bf16 %v1249_v55, %v1247_v45  ;;  %v1251_v61 = vmul.f32 %v2697_v46, %v3336_v42  ;;  %v2524_v42 = vpop.f32.mrf.mxu0 }
 0x8d6   :  { %2511 = vmatpush3.bf16.msra.mxu1 %v2609_v0 }
 0x8d7   :  { %2506 = vmatprep.mubr.msk.bf16.mxu1 %vm851_vm2, %v1256_v37  ;;  %v1257_v43 = vpack.c.bf16 %v1253_v54, %v1251_v61  ;;  %v1486_v58 = vpop.f32.mrf.mxu0 }
 0x8d9   :  { %v2525_v49 = vpop.f32.mrf.mxu0 }
 0x8db   :  { %v1489_v56 = vpop.f32.mrf.mxu0 }
 0x8dd   :  { %2507 = vmatmul.mubr.msk.bf16.gmra.mxu1 %vm851_vm2, %v1257_v43  ;;  %v2528_v27 = vpop.f32.mrf.mxu0 }
 0x8df   :  { %v1502_v57 = vpop.f32.mrf.mxu0 }
 0x8e1   :  { %v2529_v20 = vpop.f32.mrf.mxu0 }
 0x8e3   :  { %v1505_v43 = vpop.f32.mrf.mxu0 }
 0x995   :  { %v2504_v60 = vpop.f32.mrf.mxu1 }
 0x997   :  { %v1316_v21 = vpop.f32.mrf.mxu1 }
 0x999   :  { %v2505_v17 = vpop.f32.mrf.mxu1 }
 0x99a   :  { %v1348_v26 = vpack.c.bf16 %v2505_v17, %v2504_v60 }
 0x99b   :  { %v1319_v23 = vpop.f32.mrf.mxu1 }
 0x99c   :  { %v1347_v8 = vpack.c.bf16 %v1319_v23, %v1316_v21 }
 0x99d   :  { %v2508_v47 = vpop.f32.mrf.mxu1 }
 0x99e   :  { %2512 = vmatprep.mubr.msk.bf16.mxu1 %vm745_vm11, %v1347_v8 }
 0x99f   :  { %v1332_v32 = vpop.f32.mrf.mxu1  ;;  %2513 = vmatmul.mubr.msk.bf16.vlgmr.msra.gmra.mxu1 %vm745_vm11, %v1348_v26 }
 0x9a1   :  { %v2509_v35 = vpop.f32.mrf.mxu1 }
 0x9a2   :  { %v1350_v36 = vpack.c.bf16 %v2509_v35, %v2508_v47 }
 0x9a3   :  { %v1335_v33 = vpop.f32.mrf.mxu1 }
 0x9a4   :  { %v1349_v11 = vpack.c.bf16 %v1335_v33, %v1332_v32 }
 0x9a6   :  { %2516 = vmatprep.mubr.msk.bf16.mxu1 %vm745_vm11, %v1349_v11 }
 0x9a7   :  { %2517 = vmatmul.mubr.msk.bf16.gmra.mxu1 %vm745_vm11, %v1350_v36 }
 0xa5f   :  { %v2514_v16 = vpop.f32.mrf.mxu1 }
 0xa60   :  { %v1495_v28 = vadd.f32 %v2524_v42, %v2514_v16 }
 0xa61   :  { %v1403_v48 = vpop.f32.mrf.mxu1 }
 0xa62   :  { %v1487_v22 = vadd.f32 %v1486_v58, %v1403_v48  ;;  %v1523_v29 = vadd.f32 %v1520_v38, %v1495_v28 }
 0xa63   :  { %v2515_v19 = vpop.f32.mrf.mxu1 }
 0xa64   :  { %v1521_v7 = vadd.f32 %v1520_v38, %v1487_v22  ;;  %v1498_v9 = vadd.f32 %v2525_v49, %v2515_v19  ;;  %v1531_v18 = vadd.f32 %v1523_v29, %v3041_v52 }
 0xa65   :  { %v1406_v10 = vpop.f32.mrf.mxu1 }
 0xa66   :  { %v1490_v30 = vadd.f32 %v1489_v56, %v1406_v10  ;;  %v1529_v62 = vadd.f32 %v1521_v7, %v3032_v39  ;;  %v1524_v25 = vadd.f32 %v1520_v38, %v1498_v9  ;;  %v1543_v37 = vsel %vm393_vm10, %v1531_v18, 0.0 }
 0xa67   :  { %v2518_v24 = vpop.f32.mrf.mxu1 }
 0xa68   :  { %v1522_v0 = vadd.f32 %v1520_v38, %v1490_v30  ;;  %v1511_v51 = vadd.f32 %v2528_v27, %v2518_v24  ;;  %v1537_v14 = vsel %vm393_vm10, %v1529_v62, 0.0  ;;  %v1532_v46 = vadd.f32 %v1524_v25, %v3043_v53 }
 0xa69   :  { %1538 = vadd.xlane.f32.xlu0 %v1537_v14  ;;  %v1419_v15 = vpop.f32.mrf.mxu1 }
 0xa6a   :  { %v1503_v45 = vadd.f32 %v1502_v57, %v1419_v15  ;;  %v1530_v55 = vadd.f32 %v1522_v0, %v3034_v40  ;;  %v1527_v39 = vadd.f32 %v1520_v38, %v1511_v51  ;;  %v1546_v23 = vsel %vm393_vm10, %v1532_v46, 0.0 }
 0xa6b   :  { %v2519_v13 = vpop.f32.mrf.mxu1 }
 0xa6c   :  { %v1525_v54 = vadd.f32 %v1520_v38, %v1503_v45  ;;  %v1514_v61 = vadd.f32 %v2529_v20, %v2519_v13  ;;  %v1540_v52 = vsel %vm393_vm10, %v1530_v55, 0.0  ;;  %v1535_v53 = vadd.f32 %v1527_v39, %v3058_v2 }
 0xa6d   :  { %1544 = vadd.xlane.f32.xlu0 %v1543_v37  ;;  %1541 = vadd.xlane.f32.xlu1 %v1540_v52  ;;  %v1422_v60 = vpop.f32.mrf.mxu1  ;;  %v2610_v52 = vld [vmem:[%s3627_s9 + $0x8] sm:$0xff]  }
 0xa6e   :  { %v1506_v21 = vadd.f32 %v1505_v43, %v1422_v60  ;;  %v1533_v17 = vadd.f32 %v1525_v54, %v3050_v34  ;;  %v1528_v40 = vadd.f32 %v1520_v38, %v1514_v61  ;;  %v1555_v32 = vsel %vm393_vm10, %v1535_v53, 0.0  ;;  %2530 = vmatprep.subr.bf16.mxu1 %v2610_v52  ;;  %v2611_v43 = vld [vmem:[%s3627_s9] sm:$0xff]  }
 0xa6f   :  { %2531 = vmatpush3.bf16.msra.mxu1 %v2610_v52 }
 0xa70   :  { %v1526_v8 = vadd.f32 %v1520_v38, %v1506_v21  ;;  %v1549_v26 = vsel %vm393_vm10, %v1533_v17, 0.0  ;;  %v1536_v33 = vadd.f32 %v1528_v40, %v3061_v5  ;;  %2532 = vmatprep.subr.bf16.mxu1 %v2611_v43 }
 0xa71   :  { %1547 = vadd.xlane.f32.xlu0 %v1546_v23  ;;  %1550 = vadd.xlane.f32.xlu1 %v1549_v26 }
 0xa72   :  { %v1534_v47 = vadd.f32 %v1526_v8, %v3053_v63  ;;  %v1558_v34 = vsel %vm393_vm10, %v1536_v33, 0.0 }
 0xa73   :  { %2533 = vmatpush3.bf16.msra.mxu1 %v2611_v43 }
 0xa74   :  { %v1552_v35 = vsel %vm393_vm10, %v1534_v47, 0.0  ;;  %2558 = vmatprep.subr.mxu1 %v2772_v44 }
 0xa75   :  { %1556 = vadd.xlane.f32.xlu1 %v1555_v32  ;;  %1553 = vadd.xlane.f32.xlu0 %v1552_v35 }
 0xa79   :  { %1559 = vadd.xlane.f32.xlu0 %v1558_v34 }
 0xaf2   :  { %v1539_v11 = vpop.xlane.xlu0 %1538 }
 0xaf3   :  { %v1561_v36 = vmul.f32 0.03125, %v1539_v11 }
 0xaf5   :  { %v3386_v42 = vsub.f32 %v1529_v62, %v1561_v36 }
 0xaf6   :  { %v1545_v2 = vpop.xlane.xlu0 %1544  ;;  %v1542_v58 = vpop.xlane.xlu1 %1541 }
 0xaf7   :  { %v1563_v49 = vmul.f32 0.03125, %v1545_v2  ;;  %v1562_v1 = vmul.f32 0.03125, %v1542_v58  ;;  %v1577_v63 = vmul.f32 %v3386_v42, %v3386_v42 }
 0xaf9   :  { %v3390_v56 = vsub.f32 %v1531_v18, %v1563_v49  ;;  %v3392_v16 = vsub.f32 %v1530_v55, %v1562_v1  ;;  %v1585_v5 = vsel %vm393_vm10, %v1577_v63, 0.0  ;;  %v1643_v63 = vsub.s32 6, %v2947_v3 }
 0xafa   :  { %v1548_v38 = vpop.xlane.xlu0 %1547  ;;  %1586 = vadd.xlane.f32.xlu1 %v1585_v5  ;;  %v1551_v28 = vpop.xlane.xlu1 %1550 }
 0xafb   :  { %v1564_v27 = vmul.f32 0.03125, %v1548_v38  ;;  %v1565_v48 = vmul.f32 0.03125, %v1551_v28  ;;  %v1579_v22 = vmul.f32 %v3390_v56, %v3390_v56  ;;  %v1578_v29 = vmul.f32 %v3392_v16, %v3392_v16 }
 0xafd   :  { %v3399_v19 = vsub.f32 %v1532_v46, %v1564_v27  ;;  %v3401_v7 = vsub.f32 %v1533_v17, %v1565_v48  ;;  %v1591_v9 = vsel %vm393_vm10, %v1579_v22, 0.0  ;;  %v1588_v57 = vsel %vm393_vm10, %v1578_v29, 0.0 }
 0xafe   :  { %1592 = vadd.xlane.f32.xlu1 %v1591_v9  ;;  %v1557_v10 = vpop.xlane.xlu1 %1556  ;;  %1589 = vadd.xlane.f32.xlu0 %v1588_v57  ;;  %v1554_v30 = vpop.xlane.xlu0 %1553  ;;  %v1644_v22 = vrot.slane %v3367_v31, %v1643_v63  ;;  %v1655_v57 = vsub.s32 7, %v2947_v3 }
 0xaff   :  { %v1567_v62 = vmul.f32 0.03125, %v1557_v10  ;;  %v1566_v25 = vmul.f32 0.03125, %v1554_v30  ;;  %v1581_v24 = vmul.f32 %v3401_v7, %v3401_v7  ;;  %v1580_v18 = vmul.f32 %v3399_v19, %v3399_v19 }
 0xb01   :  { %v3409_v0 = vsub.f32 %v1535_v53, %v1567_v62  ;;  %v3411_v51 = vsub.f32 %v1534_v47, %v1566_v25  ;;  %v1597_v14 = vsel %vm393_vm10, %v1581_v24, 0.0  ;;  %v1594_v20 = vsel %vm393_vm10, %v1580_v18, 0.0 }
 0xb02   :  { %1598 = vadd.xlane.f32.xlu1 %v1597_v14  ;;  %1595 = vadd.xlane.f32.xlu0 %v1594_v20  ;;  %v1560_v15 = vpop.xlane.xlu0 %1559  ;;  %v1656_v25 = vrot.slane %v3367_v31, %v1655_v57 }
 0xb03   :  { %v1568_v45 = vmul.f32 0.03125, %v1560_v15  ;;  %v1583_v55 = vmul.f32 %v3409_v0, %v3409_v0  ;;  %v1582_v13 = vmul.f32 %v3411_v51, %v3411_v51 }
 0xb05   :  { %v3419_v37 = vsub.f32 %v1536_v33, %v1568_v45  ;;  %v1603_v46 = vsel %vm393_vm10, %v1583_v55, 0.0  ;;  %v1600_v39 = vsel %vm393_vm10, %v1582_v13, 0.0 }
 0xb06   :  { %1604 = vadd.xlane.f32.xlu1 %v1603_v46  ;;  %1601 = vadd.xlane.f32.xlu0 %v1600_v39 }
 0xb07   :  { %v1584_v54 = vmul.f32 %v3419_v37, %v3419_v37 }
 0xb09   :  { %v1606_v61 = vsel %vm393_vm10, %v1584_v54, 0.0 }
 0xb0a   :  { %1607 = vadd.xlane.f32.xlu0 %v1606_v61 }
 0xb83   :  { %v1587_v60 = vpop.xlane.xlu1 %1586 }
 0xb84   :  { %v1609_v21 = vmul.f32 0.03125, %v1587_v60 }
 0xb86   :  { %v1617_v17 = vadd.f32 1e-12, %v1609_v21 }
 0xb87   :  { %v1593_v23 = vpop.xlane.xlu1 %1592  ;;  %v1590_v40 = vpop.xlane.xlu0 %1589 }
 0xb88   :  { %2698 = vrsqrt.f32 %v1617_v17  ;;  %v1611_v8 = vmul.f32 0.03125, %v1593_v23  ;;  %v1610_v26 = vmul.f32 0.03125, %v1590_v40 }
 0xb8a   :  { %v1619_v53 = vadd.f32 1e-12, %v1611_v8  ;;  %v1618_v47 = vadd.f32 1e-12, %v1610_v26 }
 0xb8b   :  { %v1599_v32 = vpop.xlane.xlu1 %1598  ;;  %v1596_v35 = vpop.xlane.xlu0 %1595 }
 0xb8c   :  { %2700 = vrsqrt.f32 %v1619_v53  ;;  %v1613_v33 = vmul.f32 0.03125, %v1599_v32  ;;  %v1612_v34 = vmul.f32 0.03125, %v1596_v35  ;;  %v2613_v32 = vld [vmem:[%s3628_s10 + $0x10] sm:$0xff]   ;;  %v2614_v35 = vld [vmem:[%s3628_s10 + $0x8] sm:$0xff]  }
 0xb8d   :  { %2702 = vrsqrt.f32 %v1618_v47  ;;  %v2612_v47 = vld [vmem:[%s3628_s10 + $0x18] sm:$0xff]  }
 0xb8e   :  { %v1621_v11 = vadd.f32 1e-12, %v1613_v33  ;;  %v1620_v36 = vadd.f32 1e-12, %v1612_v34  ;;  %2542 = vmatprep.subr.bf16.mxu0 %v2612_v47  ;;  %v2615_v33 = vld [vmem:[%s3628_s10] sm:$0xff]  }
 0xb8f   :  { %v1605_v2 = vpop.xlane.xlu1 %1604  ;;  %v1602_v58 = vpop.xlane.xlu0 %1601  ;;  %2543 = vmatpush3.bf16.msra.mxu0 %v2612_v47  ;;  %v3489_v34 = vld [vmem:[%s3630_s12 + $0x8] sm:$0x1f] }
 0xb90   :  { %2704 = vrsqrt.f32 %v1621_v11  ;;  %v1615_v49 = vmul.f32 0.03125, %v1605_v2  ;;  %v1614_v1 = vmul.f32 0.03125, %v1602_v58  ;;  %2544 = vmatprep.subr.bf16.mxu0 %v2613_v32  ;;  %v1676_v11 = vrot.slane %v3489_v34, %v2953_v6 }
 0xb91   :  { %2706 = vrsqrt.f32 %v1620_v36 }
 0xb92   :  { %v1623_v5 = vadd.f32 1e-12, %v1615_v49  ;;  %v1622_v38 = vadd.f32 1e-12, %v1614_v1 }
 0xb93   :  { %v1608_v28 = vpop.xlane.xlu0 %1607  ;;  %2545 = vmatpush3.bf16.msra.mxu0 %v2613_v32 }
 0xb94   :  { %2708 = vrsqrt.f32 %v1623_v5  ;;  %v1616_v27 = vmul.f32 0.03125, %v1608_v28  ;;  %2546 = vmatprep.subr.bf16.mxu0 %v2614_v35 }
 0xb95   :  { %v2699_v48 = vpop.eup %2698  ;;  %2710 = vrsqrt.f32 %v1622_v38 }
 0xb96   :  { %v1624_v29 = vadd.f32 1e-12, %v1616_v27  ;;  %v1633_v9 = vmul.f32 %v2699_v48, %v3386_v42 }
 0xb97   :  { %2547 = vmatpush3.bf16.msra.mxu0 %v2614_v35 }
 0xb98   :  { %2712 = vrsqrt.f32 %v1624_v29  ;;  %v1645_v62 = vmul.f32 %v1644_v22, %v1633_v9  ;;  %2548 = vmatprep.subr.bf16.mxu0 %v2615_v33 }
 0xb99   :  { %v2701_v10 = vpop.eup %2700 }
 0xb9a   :  { %v2703_v30 = vpop.eup %2702  ;;  %v1635_v24 = vmul.f32 %v2701_v10, %v3390_v56  ;;  %v3440_v45 = vadd.f32 %v1656_v25, %v1645_v62 }
 0xb9b   :  { %v1634_v18 = vmul.f32 %v2703_v30, %v3392_v16  ;;  %2549 = vmatpush3.bf16.msra.mxu0 %v2615_v33 }
 0xb9c   :  { %v1647_v55 = vmul.f32 %v1644_v22, %v1635_v24  ;;  %2577 = vmatprep.subr.bf16.mxu0 %v2772_v44 }
 0xb9d   :  { %v2705_v14 = vpop.eup %2704  ;;  %v1646_v20 = vmul.f32 %v1644_v22, %v1634_v18 }
 0xb9e   :  { %v2707_v15 = vpop.eup %2706  ;;  %v1637_v46 = vmul.f32 %v2705_v14, %v3401_v7  ;;  %v3450_v61 = vadd.f32 %v1656_v25, %v1647_v55 }
 0xb9f   :  { %v1636_v42 = vmul.f32 %v2707_v15, %v3399_v19  ;;  %v3443_v13 = vadd.f32 %v1656_v25, %v1646_v20 }
 0xba0   :  { %v1649_v43 = vmul.f32 %v1644_v22, %v1637_v46 }
 0xba1   :  { %v2709_v39 = vpop.eup %2708  ;;  %v1648_v54 = vmul.f32 %v1644_v22, %v1636_v42  ;;  %v1665_v31 = vpack.c.bf16 %v3443_v13, %v3440_v45 }
 0xba2   :  { %v2711_v56 = vpop.eup %2710  ;;  %v1639_v16 = vmul.f32 %v2709_v39, %v3409_v0  ;;  %v3459_v0 = vadd.f32 %v1656_v25, %v1649_v43 }
 0xba3   :  { %2534 = vmatprep.mubr.msk.bf16.mxu1 %vm393_vm10, %v1665_v31  ;;  %v3452_v52 = vadd.f32 %v1656_v25, %v1648_v54  ;;  %v1638_v19 = vmul.f32 %v2711_v56, %v3411_v51 }
 0xba4   :  { %v1651_v23 = vmul.f32 %v1644_v22, %v1639_v16 }
 0xba5   :  { %v2713_v60 = vpop.eup %2712  ;;  %v1666_v7 = vpack.c.bf16 %v3452_v52, %v3450_v61  ;;  %v1650_v21 = vmul.f32 %v1644_v22, %v1638_v19 }
 0xba6   :  { %v1640_v17 = vmul.f32 %v2713_v60, %v3419_v37  ;;  %v3465_v51 = vadd.f32 %v1656_v25, %v1651_v23 }
 0xba7   :  { %2535 = vmatmul.mubr.msk.bf16.vlgmr.msra.gmra.mxu1 %vm393_vm10, %v1666_v7  ;;  %v3461_v40 = vadd.f32 %v1656_v25, %v1650_v21 }
 0xba8   :  { %v1652_v8 = vmul.f32 %v1644_v22, %v1640_v17 }
 0xba9   :  { %v1667_v26 = vpack.c.bf16 %v3461_v40, %v3459_v0 }
 0xbaa   :  { %v3467_v53 = vadd.f32 %v1656_v25, %v1652_v8 }
 0xbab   :  { %2538 = vmatprep.mubr.msk.bf16.mxu1 %vm393_vm10, %v1667_v26 }
 0xbac   :  { %v1668_v37 = vpack.c.bf16 %v3467_v53, %v3465_v51 }
 0xbaf   :  { %2539 = vmatmul.mubr.msk.bf16.gmra.mxu1 %vm393_vm10, %v1668_v37 }
 0xbb0   :  { %2574 = vmatprep.mubr.msk.f32.mxu1 %vm2780_vm5, %v2772_v44 }
 0xc67   :  { %v2536_v36 = vpop.f32.mrf.mxu1 }
 0xc68   :  { %v3493_v2 = vadd.f32 %v2536_v36, %v1676_v11 }
 0xc69   :  { %v1735_v58 = vpop.f32.mrf.mxu1 }
 0xc6a   :  { %v1776_v49 = vmul.f32 0.044715, %v3493_v2  ;;  %v3496_v1 = vadd.f32 %v1735_v58, %v1676_v11 }
 0xc6b   :  { %v2537_v63 = vpop.f32.mrf.mxu1 }
 0xc6c   :  { %v1784_v5 = vmul.f32 %v1776_v49, %v3493_v2  ;;  %v1774_v38 = vmul.f32 0.044715, %v3496_v1  ;;  %v1747_v28 = vadd.f32 %v2537_v63, %v1676_v11 }
 0xc6d   :  { %v1738_v27 = vpop.f32.mrf.mxu1 }
 0xc6e   :  { %v1792_v48 = vmul.f32 %v1784_v5, %v3493_v2  ;;  %v1782_v22 = vmul.f32 %v1774_v38, %v3496_v1  ;;  %v1777_v6 = vmul.f32 0.044715, %v1747_v28  ;;  %v1739_v29 = vadd.f32 %v1738_v27, %v1676_v11 }
 0xc6f   :  { %v2540_v9 = vpop.f32.mrf.mxu1 }
 0xc70   :  { %v1800_v57 = vadd.f32 %v1792_v48, %v3493_v2  ;;  %v1790_v10 = vmul.f32 %v1782_v22, %v3496_v1  ;;  %v1785_v30 = vmul.f32 %v1777_v6, %v1747_v28  ;;  %v3504_v62 = vadd.f32 %v2540_v9, %v1676_v11 }
 0xc71   :  { %v1775_v25 = vmul.f32 0.044715, %v1739_v29  ;;  %v1751_v24 = vpop.f32.mrf.mxu1 }
 0xc72   :  { %v1808_v18 = vmul.f32 0.7978846, %v1800_v57  ;;  %v1798_v14 = vadd.f32 %v1790_v10, %v3496_v1  ;;  %v1793_v20 = vmul.f32 %v1785_v30, %v1747_v28  ;;  %v1780_v15 = vmul.f32 0.044715, %v3504_v62 }
 0xc73   :  { %v1783_v55 = vmul.f32 %v1775_v25, %v1739_v29  ;;  %v1752_v42 = vadd.f32 %v1751_v24, %v1676_v11  ;;  %v2541_v46 = vpop.f32.mrf.mxu1  ;;  %v1769_v24 = vmul.f32 0.5, %v1747_v28 }
 0xc74   :  { %v1806_v39 = vmul.f32 0.7978846, %v1798_v14  ;;  %v1801_v54 = vadd.f32 %v1793_v20, %v1747_v28  ;;  %v1788_v31 = vmul.f32 %v1780_v15, %v3504_v62  ;;  %v1763_v19 = vadd.f32 %v2541_v46, %v1676_v11 }
 0xc75   :  { %v1791_v56 = vmul.f32 %v1783_v55, %v1739_v29  ;;  %v1778_v16 = vmul.f32 0.044715, %v1752_v42  ;;  %v1754_v43 = vpop.f32.mrf.mxu1  ;;  %2714 = vtanh.f32 %v1808_v18  ;;  %v1766_v18 = vmul.f32 0.5, %v3496_v1 }
 0xc76   :  { %v1809_v60 = vmul.f32 0.7978846, %v1801_v54  ;;  %v1796_v7 = vmul.f32 %v1788_v31, %v3504_v62  ;;  %v1755_v21 = vadd.f32 %v1754_v43, %v1676_v11  ;;  %2716 = vtanh.f32 %v1806_v39 }
 0xc77   :  { %v1799_v17 = vadd.f32 %v1791_v56, %v1739_v29  ;;  %v1786_v23 = vmul.f32 %v1778_v16, %v1752_v42  ;;  %v1781_v8 = vmul.f32 0.044715, %v1763_v19  ;;  %v1767_v14 = vmul.f32 0.5, %v1739_v29 }
 0xc78   :  { %2718 = vtanh.f32 %v1809_v60  ;;  %v1804_v26 = vadd.f32 %v1796_v7, %v3504_v62  ;;  %v1779_v37 = vmul.f32 0.044715, %v1755_v21  ;;  %v1768_v15 = vmul.f32 0.5, %v3493_v2 }
 0xc79   :  { %v1807_v47 = vmul.f32 0.7978846, %v1799_v17  ;;  %v1794_v32 = vmul.f32 %v1786_v23, %v1752_v42  ;;  %v1789_v35 = vmul.f32 %v1781_v8, %v1763_v19  ;;  %v1770_v28 = vmul.f32 0.5, %v1752_v42 }
 0xc7a   :  { %v1787_v33 = vmul.f32 %v1779_v37, %v1755_v21  ;;  %v1812_v49 = vmul.f32 0.7978846, %v1804_v26  ;;  %v1771_v1 = vmul.f32 0.5, %v1755_v21  ;;  %v1773_v2 = vmul.f32 0.5, %v1763_v19 }
 0xc7b   :  { %2720 = vtanh.f32 %v1807_v47  ;;  %v1802_v36 = vadd.f32 %v1794_v32, %v1752_v42  ;;  %v1797_v58 = vmul.f32 %v1789_v35, %v1763_v19  ;;  %v1772_v47 = vmul.f32 0.5, %v3504_v62 }
 0xc7c   :  { %v1795_v63 = vmul.f32 %v1787_v33, %v1755_v21 }
 0xc7d   :  { %v1810_v5 = vmul.f32 0.7978846, %v1802_v36  ;;  %v1805_v38 = vadd.f32 %v1797_v58, %v1763_v19  ;;  %v1853_v19 = vrot.slane %v3489_v34, %v2950_v4 }
 0xc7e   :  { %v1803_v11 = vadd.f32 %v1795_v63, %v1755_v21 }
 0xc7f   :  { %2722 = vtanh.f32 %v1810_v5  ;;  %v1813_v27 = vmul.f32 0.7978846, %v1805_v38 }
 0xc80   :  { %2724 = vtanh.f32 %v1812_v49  ;;  %v1811_v48 = vmul.f32 0.7978846, %v1803_v11 }
 0xc81   :  { %2726 = vtanh.f32 %v1813_v27 }
 0xc82   :  { %2728 = vtanh.f32 %v1811_v48  ;;  %v2715_v22 = vpop.eup %2714 }
 0xc83   :  { %v2717_v6 = vpop.eup %2716  ;;  %v1824_v25 = vadd.f32 1.0, %v2715_v22 }
 0xc84   :  { %v1822_v10 = vadd.f32 1.0, %v2717_v6 }
 0xc85   :  { %v2719_v9 = vpop.eup %2718  ;;  %v1832_v31 = vmul.f32 %v1824_v25, %v1768_v15 }
 0xc86   :  { %v1825_v57 = vadd.f32 1.0, %v2719_v9  ;;  %v1830_v46 = vmul.f32 %v1822_v10, %v1766_v18 }
 0xc88   :  { %v2721_v30 = vpop.eup %2720  ;;  %v1833_v55 = vmul.f32 %v1825_v57, %v1769_v24 }
 0xc89   :  { %v1823_v20 = vadd.f32 1.0, %v2721_v30 }
 0xc8a   :  { %v1839_v60 = vpack.c.bf16 %v1833_v55, %v1832_v31 }
 0xc8b   :  { %v1831_v39 = vmul.f32 %v1823_v20, %v1767_v14 }
 0xc8c   :  { %v2723_v54 = vpop.eup %2722 }
 0xc8d   :  { %v2725_v56 = vpop.eup %2724  ;;  %v1838_v16 = vpack.c.bf16 %v1831_v39, %v1830_v46  ;;  %v1826_v7 = vadd.f32 1.0, %v2723_v54 }
 0xc8e   :  { %v2727_v43 = vpop.eup %2726  ;;  %v1828_v8 = vadd.f32 1.0, %v2725_v56 }
 0xc8f   :  { %v2729_v17 = vpop.eup %2728  ;;  %2550 = vmatprep.mubr.msk.bf16.mxu0 %vm851_vm2, %v1838_v16  ;;  %v1829_v23 = vadd.f32 1.0, %v2727_v43  ;;  %v1834_v26 = vmul.f32 %v1826_v7, %v1770_v28 }
 0xc90   :  { %2551 = vmatmul.mubr.msk.bf16.vlgmr.msra.gmra.mxu0 %vm851_vm2, %v1839_v60  ;;  %v1827_v29 = vadd.f32 1.0, %v2729_v17  ;;  %v1836_v33 = vmul.f32 %v1828_v8, %v1772_v47 }
 0xc91   :  { %v1837_v32 = vmul.f32 %v1829_v23, %v1773_v2 }
 0xc92   :  { %v1835_v37 = vmul.f32 %v1827_v29, %v1771_v1 }
 0xc93   :  { %v1841_v36 = vpack.c.bf16 %v1837_v32, %v1836_v33 }
 0xc94   :  { %v1840_v35 = vpack.c.bf16 %v1835_v37, %v1834_v26 }
 0xc96   :  { %2554 = vmatprep.mubr.msk.bf16.mxu0 %vm851_vm2, %v1840_v35 }
 0xc98   :  { %2555 = vmatmul.mubr.msk.bf16.gmra.mxu0 %vm851_vm2, %v1841_v36 }
 0xc99   :  { %2581 = vmatprep.mubr.msk.bf16.mxu0 %vm2780_vm5, %v2772_v44 }
 0xd50   :  { %v2552_v42 = vpop.f32.mrf.mxu0 }
 0xd51   :  { %v1933_v27 = vadd.f32 %v2552_v42, %v1853_v19 }
 0xd52   :  { %v1924_v58 = vpop.f32.mrf.mxu0 }
 0xd53   :  { %v1957_v4 = vadd.f32 %v1933_v27, %v3450_v61  ;;  %v1925_v25 = vadd.f32 %v1924_v58, %v1853_v19 }
 0xd54   :  { %v2553_v49 = vpop.f32.mrf.mxu0 }
 0xd55   :  { %v1936_v24 = vadd.f32 %v2553_v49, %v1853_v19  ;;  %v1969_v55 = vsel %vm393_vm10, %v1957_v4, 0.0 }
 0xd56   :  { %v1927_v63 = vpop.f32.mrf.mxu0 }
 0xd57   :  { %v1958_v20 = vadd.f32 %v1936_v24, %v3452_v52  ;;  %v1928_v15 = vadd.f32 %v1927_v63, %v1853_v19 }
 0xd58   :  { %v2556_v21 = vpop.f32.mrf.mxu0 }
 0xd59   :  { %v1949_v5 = vadd.f32 %v2556_v21, %v1853_v19  ;;  %v1956_v61 = vadd.f32 %v1928_v15, %v3443_v13 }
 0xd5a   :  { %v1940_v38 = vpop.f32.mrf.mxu0 }
 0xd5b   :  { %v1961_v62 = vadd.f32 %v1949_v5, %v3465_v51  ;;  %v1941_v11 = vadd.f32 %v1940_v38, %v1853_v19  ;;  %v1966_v39 = vsel %vm393_vm10, %v1956_v61, 0.0 }
 0xd5c   :  { %v2557_v48 = vpop.f32.mrf.mxu0 }
 0xd5d   :  { %v1959_v22 = vadd.f32 %v1941_v11, %v3459_v0  ;;  %v1952_v6 = vadd.f32 %v2557_v48, %v1853_v19  ;;  %v1981_v9 = vsel %vm393_vm10, %v1961_v62, 0.0  ;;  %v1955_v0 = vadd.f32 %v1925_v25, %v3440_v45 }
 0xd5e   :  { %1982 = vadd.xlane.f32.xlu0 %v1981_v9  ;;  %v1943_v57 = vpop.f32.mrf.mxu0 }
 0xd5f   :  { %v1962_v10 = vadd.f32 %v1952_v6, %v3467_v53  ;;  %v1944_v30 = vadd.f32 %v1943_v57, %v1853_v19  ;;  %v1975_v14 = vsel %vm393_vm10, %v1959_v22, 0.0  ;;  %v1963_v46 = vsel %vm393_vm10, %v1955_v0, 0.0 }
 0xd61   :  { %v1960_v18 = vadd.f32 %v1944_v30, %v3461_v40  ;;  %v1984_v51 = vsel %vm393_vm10, %v1962_v10, 0.0  ;;  %v1972_v40 = vsel %vm393_vm10, %v1958_v20, 0.0  ;;  %v2617_v30 = vld [vmem:[%s3629_s11] sm:$0xff]  }
 0xd62   :  { %1985 = vadd.xlane.f32.xlu1 %v1984_v51  ;;  %1976 = vadd.xlane.f32.xlu0 %v1975_v14 }
 0xd63   :  { %v1978_v53 = vsel %vm393_vm10, %v1960_v18, 0.0 }
 0xd66   :  { %1979 = vadd.xlane.f32.xlu1 %v1978_v53  ;;  %1970 = vadd.xlane.f32.xlu0 %v1969_v55 }
 0xd6a   :  { %1973 = vadd.xlane.f32.xlu1 %v1972_v40  ;;  %1964 = vadd.xlane.f32.xlu0 %v1963_v46 }
 0xd6e   :  { %1967 = vadd.xlane.f32.xlu1 %v1966_v39 }
 0xde7   :  { %v1983_v45 = vpop.xlane.xlu0 %1982 }
 0xde8   :  { %v1993_v52 = vmul.f32 0.03125, %v1983_v45 }
 0xdea   :  { %v3536_v54 = vsub.f32 %v1961_v62, %v1993_v52 }
 0xdeb   :  { %v1986_v31 = vpop.xlane.xlu1 %1985  ;;  %v1977_v56 = vpop.xlane.xlu0 %1976 }
 0xdec   :  { %v1994_v16 = vmul.f32 0.03125, %v1986_v31  ;;  %v1991_v43 = vmul.f32 0.03125, %v1977_v56  ;;  %v2009_v13 = vmul.f32 %v3536_v54, %v3536_v54 }
 0xdee   :  { %v3540_v60 = vsub.f32 %v1962_v10, %v1994_v16  ;;  %v3542_v7 = vsub.f32 %v1959_v22, %v1991_v43  ;;  %v2029_v17 = vsel %vm393_vm10, %v2009_v13, 0.0  ;;  %v2616_v10 = vld [vmem:[%s3629_s11 + $0x8] sm:$0xff]   ;;  %s2781_s11 = smov [#allocation2]  }
 0xdef   :  { %v1980_v28 = vpop.xlane.xlu1 %1979  ;;  %2030 = vadd.xlane.f32.xlu0 %v2029_v17  ;;  %v1971_v23 = vpop.xlane.xlu0 %1970  ;;  %2578 = vmatpush3.bf16.msra.mxu0 %v2616_v10  ;;  %v2070_v17 = vrot.slane %v3489_v34, %v675_v50  ;;  %s2242_s6 = sshll.u32 %s2781_s11, 4  ;;  %s2243_s6 = int_to_ptr.vmem [resolvable:$true] %s2242_s6 }
 0xdf0   :  { %v1992_v1 = vmul.f32 0.03125, %v1980_v28  ;;  %v1989_v29 = vmul.f32 0.03125, %v1971_v23  ;;  %v2010_v2 = vmul.f32 %v3540_v60, %v3540_v60  ;;  %v2007_v8 = vmul.f32 %v3542_v7, %v3542_v7  ;;  %2579 = vmatprep.subr.bf16.mxu0 %v2772_v44  ;;  %s2749_s3 = scalar_lea.vmem %s2243_s6, 128  ;;  %p2754_p1 = scmp.lt.s32.totalorder %s2243_s6, %s2243_s6 }
 0xdf1   :  { %p2750_p0 = scmp.ne.s32.totalorder %s2243_s6, %s2749_s3  ;;  %p2755_p2 = scmp.lt.s32.totalorder %s2749_s3, %s2749_s3 }
 0xdf2   :  { %v3549_v26 = vsub.f32 %v1960_v18, %v1992_v1  ;;  %v3551_v37 = vsub.f32 %v1957_v4, %v1989_v29  ;;  %v2032_v47 = vsel %vm393_vm10, %v2010_v2, 0.0  ;;  %v2023_v32 = vsel %vm393_vm10, %v2007_v8, 0.0 }
 0xdf3   :  { %2033 = vadd.xlane.f32.xlu1 %v2032_v47  ;;  %v1974_v35 = vpop.xlane.xlu1 %1973  ;;  %2024 = vadd.xlane.f32.xlu0 %v2023_v32  ;;  %v1965_v33 = vpop.xlane.xlu0 %1964  ;;  %v2082_v1 = vrot.slane %v3489_v34, %v687_v59  ;;  %p2756_p3 = por %p2755_p2, %p2754_p1 }
 0xdf4   :  { %v1990_v36 = vmul.f32 0.03125, %v1974_v35  ;;  %v1987_v42 = vmul.f32 0.03125, %v1965_v33  ;;  %v2008_v58 = vmul.f32 %v3549_v26, %v3549_v26  ;;  %v2005_v49 = vmul.f32 %v3551_v37, %v3551_v37  ;;  %2580 = vmatpush3.bf16.msra.mxu0 %v2617_v30 }
 0xdf5   :  { %p2757_p4 = pnand %p2756_p3, %p2750_p0 }
 0xdf6   :  { %v3559_v63 = vsub.f32 %v1958_v20, %v1990_v36  ;;  %v3561_v19 = vsub.f32 %v1955_v0, %v1987_v42  ;;  %v2026_v21 = vsel %vm393_vm10, %v2008_v58, 0.0  ;;  %v2017_v5 = vsel %vm393_vm10, %v2005_v49, 0.0 }
 0xdf7   :  { %2027 = vadd.xlane.f32.xlu1 %v2026_v21  ;;  %v1968_v38 = vpop.xlane.xlu1 %1967  ;;  %2018 = vadd.xlane.f32.xlu0 %v2017_v5 }
 0xdf8   :  { %v1988_v62 = vmul.f32 0.03125, %v1968_v38  ;;  %v2006_v11 = vmul.f32 %v3559_v63, %v3559_v63  ;;  %v2003_v27 = vmul.f32 %v3561_v19, %v3561_v19 }
 0xdfa   :  { %v3569_v48 = vsub.f32 %v1956_v61, %v1988_v62  ;;  %v2020_v22 = vsel %vm393_vm10, %v2006_v11, 0.0  ;;  %v2011_v6 = vsel %vm393_vm10, %v2003_v27, 0.0 }
 0xdfb   :  { %2021 = vadd.xlane.f32.xlu1 %v2020_v22  ;;  %2012 = vadd.xlane.f32.xlu0 %v2011_v6 }
 0xdfc   :  { %v2004_v9 = vmul.f32 %v3569_v48, %v3569_v48 }
 0xdfe   :  { %v2014_v57 = vsel %vm393_vm10, %v2004_v9, 0.0 }
 0xdff   :  { %2015 = vadd.xlane.f32.xlu1 %v2014_v57  ;;  %v2093_v57 = vmul.u32 8, %v2947_v3 }
 0xe01   :  { %vm2094_vm6 = vcmp.eq.s32.totalorder %v2921_v41, %v2093_v57  ;;  %v2178_v41 = vrot.slane %v3489_v34, %v703_v12 }
 0xe78   :  { %v2031_v4 = vpop.xlane.xlu0 %2030 }
 0xe79   :  { %v2041_v25 = vmul.f32 0.03125, %v2031_v4 }
 0xe7b   :  { %v2049_v24 = vadd.f32 1e-12, %v2041_v25  ;;  %v2314_v25 = vsel %vm2094_vm6, 1.0, %v2772_v44 }
 0xe7c   :  { %v2034_v18 = vpop.xlane.xlu1 %2033  ;;  %v2025_v51 = vpop.xlane.xlu0 %2024 }
 0xe7d   :  { %2730 = vrsqrt.f32 %v2049_v24  ;;  %v2042_v14 = vmul.f32 0.03125, %v2034_v18  ;;  %v2039_v0 = vmul.f32 0.03125, %v2025_v51 }
 0xe7f   :  { %v2050_v20 = vadd.f32 1e-12, %v2042_v14  ;;  %v2047_v15 = vadd.f32 1e-12, %v2039_v0 }
 0xe80   :  { %v2028_v53 = vpop.xlane.xlu1 %2027  ;;  %v2019_v55 = vpop.xlane.xlu0 %2018 }
 0xe81   :  { %2732 = vrsqrt.f32 %v2050_v20  ;;  %v2040_v61 = vmul.f32 0.03125, %v2028_v53  ;;  %v2037_v40 = vmul.f32 0.03125, %v2019_v55 }
 0xe82   :  { %2734 = vrsqrt.f32 %v2047_v15 }
 0xe83   :  { %v2048_v46 = vadd.f32 1e-12, %v2040_v61  ;;  %v2045_v39 = vadd.f32 1e-12, %v2037_v40 }
 0xe84   :  { %v2022_v45 = vpop.xlane.xlu1 %2021  ;;  %v2013_v52 = vpop.xlane.xlu0 %2012 }
 0xe85   :  { %2736 = vrsqrt.f32 %v2048_v46  ;;  %v2038_v31 = vmul.f32 0.03125, %v2022_v45  ;;  %v2035_v56 = vmul.f32 0.03125, %v2013_v52 }
 0xe86   :  { %2738 = vrsqrt.f32 %v2045_v39 }
 0xe87   :  { %v2046_v16 = vadd.f32 1e-12, %v2038_v31  ;;  %v2043_v43 = vadd.f32 1e-12, %v2035_v56 }
 0xe88   :  { %v2016_v13 = vpop.xlane.xlu1 %2015 }
 0xe89   :  { %2740 = vrsqrt.f32 %v2046_v16  ;;  %v2036_v28 = vmul.f32 0.03125, %v2016_v13 }
 0xe8a   :  { %v2731_v23 = vpop.eup %2730  ;;  %2742 = vrsqrt.f32 %v2043_v43 }
 0xe8b   :  { %v2044_v29 = vadd.f32 1e-12, %v2036_v28  ;;  %v2065_v2 = vmul.f32 %v2731_v23, %v3536_v54 }
 0xe8d   :  { %2744 = vrsqrt.f32 %v2044_v29  ;;  %v2077_v8 = vmul.f32 %v2070_v17, %v2065_v2 }
 0xe8e   :  { %v2733_v47 = vpop.eup %2732 }
 0xe8f   :  { %v2735_v32 = vpop.eup %2734  ;;  %v2066_v35 = vmul.f32 %v2733_v47, %v3540_v60  ;;  %v2089_v33 = vadd.f32 %v2082_v1, %v2077_v8 }
 0xe90   :  { %v2063_v50 = vmul.f32 %v2735_v32, %v3542_v7 }
 0xe91   :  { %v2078_v36 = vmul.f32 %v2070_v17, %v2066_v35 }
 0xe92   :  { %v2737_v42 = vpop.eup %2736  ;;  %v2075_v58 = vmul.f32 %v2070_v17, %v2063_v50 }
 0xe93   :  { %v2739_v49 = vpop.eup %2738  ;;  %v2090_v21 = vadd.f32 %v2082_v1, %v2078_v36  ;;  %v2064_v5 = vmul.f32 %v2737_v42, %v3549_v26 }
 0xe94   :  { %v2087_v59 = vadd.f32 %v2082_v1, %v2075_v58  ;;  %v2061_v38 = vmul.f32 %v2739_v49, %v3551_v37 }
 0xe95   :  { %2559 = vmatpush3.msra.mxu1 %v2090_v21  ;;  %v2076_v54 = vmul.f32 %v2070_v17, %v2064_v5 }
 0xe96   :  { %v2741_v62 = vpop.eup %2740  ;;  %2560 = vmatprep.subr.mxu1 %v2772_v44  ;;  %v2073_v11 = vmul.f32 %v2070_v17, %v2061_v38 }
 0xe97   :  { %v2743_v60 = vpop.eup %2742  ;;  %2561 = vmatpush3.msra.mxu1 %v2089_v33  ;;  %v2088_v27 = vadd.f32 %v2082_v1, %v2076_v54  ;;  %v2062_v7 = vmul.f32 %v2741_v62, %v3559_v63 }
 0xe98   :  { %2562 = vmatprep.subr.mxu1 %v2772_v44  ;;  %v2085_v22 = vadd.f32 %v2082_v1, %v2073_v11  ;;  %v2059_v6 = vmul.f32 %v2743_v60, %v3561_v19 }
 0xe99   :  { %2563 = vmatpush3.msra.mxu1 %v2088_v27  ;;  %v2074_v26 = vmul.f32 %v2070_v17, %v2062_v7 }
 0xe9a   :  { %v2745_v9 = vpop.eup %2744  ;;  %2564 = vmatprep.subr.mxu1 %v2772_v44  ;;  %v2071_v37 = vmul.f32 %v2070_v17, %v2059_v6 }
 0xe9b   :  { %2565 = vmatpush3.msra.mxu1 %v2087_v59  ;;  %v2086_v10 = vadd.f32 %v2082_v1, %v2074_v26  ;;  %v2060_v30 = vmul.f32 %v2745_v9, %v3569_v48 }
 0xe9c   :  { %2566 = vmatprep.subr.mxu1 %v2772_v44  ;;  %v2083_v63 = vadd.f32 %v2082_v1, %v2071_v37 }
 0xe9d   :  { %2567 = vmatpush3.msra.mxu1 %v2086_v10  ;;  %v2072_v4 = vmul.f32 %v2070_v17, %v2060_v30 }
 0xe9e   :  { %2568 = vmatprep.subr.mxu1 %v2772_v44 }
 0xe9f   :  { %2569 = vmatpush3.msra.mxu1 %v2085_v22  ;;  %v2084_v19 = vadd.f32 %v2082_v1, %v2072_v4 }
 0xea0   :  { %2570 = vmatprep.subr.mxu1 %v2772_v44 }
 0xea1   :  { %2571 = vmatpush3.msra.mxu1 %v2084_v19 }
 0xea2   :  { %2572 = vmatprep.subr.mxu1 %v2772_v44 }
 0xea3   :  { %2573 = vmatpush3.msra.mxu1 %v2083_v63 }
 0xea4   :  { %2575 = vmatmul.mubr.msk.f32.vlgmr.msra.gmra.mxu1 %vm851_vm2, %v2314_v25 }
 0xf64   :  { %v2166_v48 = vpop.f32.mrf.mxu1 }
 0xf65   :  { %v2170_v24 = vpack.c.bf16 %v2166_v48, %v2166_v48 }
 0xf66   :  { %v2576_v18 = vpop.f32.mrf.mxu1 }
 0xf67   :  { %2582 = vmatmul.mubr.msk.bf16.vlgmr.msra.gmra.mxu0 %vm393_vm10, %v2170_v24 }
0x1027   :  { %v2228_v51 = vpop.f32.mrf.mxu0 }
0x1028   :  { %v2229_v14 = vadd.f32 %v2228_v51, %v2178_v41 }
0x1029   :  { %v2583_v0 = vpop.f32.mrf.mxu0 }
0x102a   :  { %2746 = vtanh.f32 %v2229_v14 }
0x102b   :  { %v2231_v20 = vpop.f32.mrf.mxu0 }
0x102d   :  { %v2584_v15 = vpop.f32.mrf.mxu0 }
0x1037   :  { %v2747_v44 = vpop.eup %2746 }
0x1038   :  { %2235 = vst.msk [vmem:[#allocation2] sm:$0xff] %vm393_vm10, %v2747_v44 }
0x1039   :  { %2760 = shalt.err (!%p2757_p4)
}
0x103a   :  { %2245 = dma.vmem_to_hbm [thread:$0]  %s2243_s6, 128, %s3631_s13, [#allocation3]  }
0x103b   :  { %2769 = dma.done.wait [#allocation3], 128  }
0x103c   :  { %2770 = vsyncadd [#allocation3], 4294967168 }
0x103d   :  { %2249 = vsyncpa [#allocation3], 1 }

</bundles_post_ra>
